<compile_context>
chip_gen: v5e
topology: v5e:2x2
jax: 0.10.0
libtpu: 0.0.40
codegen_flags: <defaults>
</compile_context>

<pallas_src>
from functools import partial

import jax
import jax.numpy as jnp
from jax.experimental import pallas as pl
from jax.experimental.pallas import tpu as pltpu

BN_EPS = 1e-5

_FUSED_VMEM_BUDGET = 16 * 1024 * 1024   # use the fused single-call path below this
_STREAM_VMEM_LIMIT = 40 * 1024 * 1024
_TARGET_ELEMS_PER_STEP = 1 << 17        # ~128K f32 per channel per streaming grid step


def _round_up(a, b):
    return (a + b - 1) // b * b


def _cdiv(a, b):
    return -(-a // b)


def _padded_slab_bytes(rows, cols):
    # f32 VMEM footprint of a (rows, cols) slab after (8, 128) tile padding.
    return _round_up(max(rows, 1), 8) * _round_up(max(cols, 1), 128) * 4


def _conv1x1_hswish(p_ref, co, cin, get_x):
    """1x1 conv for one output channel (Cin scalar-broadcast FMAs on the VPU;
    channel counts are far too small for the MXU) + x * clip(x+3, 0, 6) / 6.

    p_ref is an SMEM table whose row `co` starts with [w_0 .. w_{cin-1}, b];
    get_x(ci) returns the 2-D activation slab for input channel ci.
    """
    y = p_ref[co, 0] * get_x(0)
    for ci in range(1, cin):
        y = y + p_ref[co, ci] * get_x(ci)
    y = y + p_ref[co, cin]
    return y * jnp.clip(y + 3.0, 0.0, 6.0) * (1.0 / 6.0)


# ---------------------------------------------------------------------------
# Fused single-call path: whole problem resident in VMEM.
# ---------------------------------------------------------------------------
def _fused_kernel(x_ref, p_ref, o_ref, x5_ref):
    """x_ref : (N, Cin, H, W)      VMEM  unpadded input
    p_ref : (Cout, Cin + 4)        SMEM  [w_0..w_{Cin-1}, b, gamma, beta, hswish(b)]
    o_ref : (N, Cout, H+2, W+2)    VMEM  final padded output
    x5_ref: (N, Cout, H, W)        VMEM  scratch: hswish(conv(x)) kept resident
    """
    nb, cin, H, W = x_ref.shape
    _, cout, Hp, Wp = o_ref.shape
    total = float(nb * Hp * Wp)                   # BN counts include the conv padding
    border_cnt = float(nb * (Hp * Wp - H * W))    # padded pixels all equal hswish(bias)

    # Pass A: conv + hardswish, keep x5 resident, per-channel sums.
    sums = []
    for co in range(cout):
        s = jnp.zeros((1, 1), jnp.float32)
        for n in range(nb):
            x5 = _conv1x1_hswish(p_ref, co, cin, lambda ci: x_ref[n, ci])
            x5_ref[n, co] = x5
            s = s + jnp.sum(x5, axis=(0, 1), keepdims=True)
        sums.append(s)

    # Pass B: centered variance (avoids the E[x^2]-E[x]^2 cancellation flagged
    # in review), then folded BN affine + ReLU, border written in-kernel.
    for co in range(cout):
        h = p_ref[co, cin + 3]            # hswish(bias): value of every padded pixel
        gamma = p_ref[co, cin + 1]
        beta = p_ref[co, cin + 2]
        mean = (sums[co] + border_cnt * h) * (1.0 / total)            # (1, 1)
        vs = jnp.zeros((1, 1), jnp.float32)
        for n in range(nb):
            d = x5_ref[n, co] - mean
            vs = vs + jnp.sum(d * d, axis=(0, 1), keepdims=True)
        var = (vs + border_cnt * (h - mean) * (h - mean)) * (1.0 / total)
        scale = gamma * jax.lax.rsqrt(var + BN_EPS)                   # (1, 1)
        shift = beta - mean * scale
        border = jnp.maximum(h * scale + shift, 0.0)                  # (1, 1)
        border2d = jnp.broadcast_to(border, (Hp, Wp))
        for n in range(nb):
            o_ref[n, co] = border2d                                    # fill border
            o_ref[n, co, 1:H + 1, 1:W + 1] = jnp.maximum(              # interior
                x5_ref[n, co] * scale + shift, 0.0)


def _forward_fused(x, w2, b, gamma, beta):
    N, Cin, H, W = x.shape
    Cout = w2.shape[0]
    Hp, Wp = H + 2, W + 2

    h = b * jnp.clip(b + 3.0, 0.0, 6.0) * (1.0 / 6.0)                  # (Cout, 1)
    params = jnp.concatenate(
        [w2, b, gamma.reshape(Cout, 1), beta.reshape(Cout, 1), h], axis=1)

    resident = (N * Cin * _padded_slab_bytes(H, W)
                + N * Cout * _padded_slab_bytes(Hp, Wp)
                + N * Cout * _padded_slab_bytes(H, W))
    vmem_limit = int(min(max(3 * resident, 16 * 1024 * 1024), 48 * 1024 * 1024))

    return pl.pallas_call(
        _fused_kernel,
        out_shape=jax.ShapeDtypeStruct((N, Cout, Hp, Wp), jnp.float32),
        grid=(1,),
        in_specs=[
            pl.BlockSpec((N, Cin, H, W), lambda i: (0, 0, 0, 0)),
            pl.BlockSpec(memory_space=pltpu.MemorySpace.SMEM),
        ],
        out_specs=pl.BlockSpec((N, Cout, Hp, Wp), lambda i: (0, 0, 0, 0)),
        scratch_shapes=[pltpu.VMEM((N, Cout, H, W), jnp.float32)],
        compiler_params=pltpu.CompilerParams(
            dimension_semantics=("arbitrary",),
            vmem_limit_bytes=vmem_limit),
    )(x, params)


# ---------------------------------------------------------------------------
# Streaming two-pass fallback for inputs that do not fit in VMEM.
# ---------------------------------------------------------------------------
def _make_stats_kernel(h_valid, th):
    need_mask = (h_valid % th) != 0

    def stats_kernel(x_ref, p_ref, sum_ref, sq_ref):
        # x_ref: (Cin, th, W); p_ref: SMEM (Cout, Cin+1) = [w..., b]
        # sum_ref / sq_ref: (Cout, 1) per-sample accumulators, resident over t.
        cin, rows, cols = x_ref.shape
        cout = sum_ref.shape[0]
        t = pl.program_id(1)

        @pl.when(t == 0)
        def _():
            sum_ref[...] = jnp.zeros_like(sum_ref)
            sq_ref[...] = jnp.zeros_like(sq_ref)

        if need_mask:
            rid = jax.lax.broadcasted_iota(jnp.int32, (rows, cols), 0)
            valid = rid < (h_valid - t * th)

        for co in range(cout):
            x5 = _conv1x1_hswish(p_ref, co, cin, lambda ci: x_ref[ci])
            if need_mask:
                x5 = jnp.where(valid, x5, 0.0)
            sum_ref[co:co + 1, :] += jnp.sum(x5, axis=(0, 1), keepdims=True)
            sq_ref[co:co + 1, :] += jnp.sum(x5 * x5, axis=(0, 1), keepdims=True)

    return stats_kernel


def _apply_kernel(x_ref, p_ref, o_ref):
    # x_ref: (Cin, th, W); p_ref: SMEM (Cout, Cin+3) = [w..., b, scale, shift]
    # o_ref: (Cout, th, W) interior output tile (out-of-range rows are discarded).
    cin = x_ref.shape[0]
    cout = o_ref.shape[0]
    for co in range(cout):
        x5 = _conv1x1_hswish(p_ref, co, cin, lambda ci: x_ref[ci])
        o_ref[co] = jnp.maximum(x5 * p_ref[co, cin + 1] + p_ref[co, cin + 2], 0.0)


def _pick_row_tile(H, W, Cin, Cout):
    th = _round_up(max(8, _cdiv(_TARGET_ELEMS_PER_STEP, W)), 8)
    cap = (12 * 1024 * 1024) // (2 * (Cin + Cout) * W * 4)   # double-buffered in+out
    if cap >= 8:
        th = min(th, cap // 8 * 8)
    else:
        th = 8
    return H if th >= H else th


def _forward_streaming(x, w2, b, gamma, beta, row_tile):
    N, Cin, H, W = x.shape
    Cout = w2.shape[0]
    Hp, Wp = H + 2, W + 2

    th = _pick_row_tile(H, W, Cin, Cout) if row_tile is None else min(row_tile, H)
    assert th == H or th % 8 == 0, "row tile must be a multiple of 8 or the full height"
    T = _cdiv(H, th)

    x_spec = pl.BlockSpec((None, Cin, th, W), lambda n, t: (n, 0, t, 0))
    p_spec = pl.BlockSpec(memory_space=pltpu.MemorySpace.SMEM)
    acc_spec = pl.BlockSpec((None, Cout, 1), lambda n, t: (n, 0, 0))

    # Pass 1: per-sample partial stats; N is 'parallel' so a megacore part (v7x)
    # can split the batch, t is the sequential accumulator axis.
    p1 = jnp.concatenate([w2, b], axis=1)
    psum, psq = pl.pallas_call(
        _make_stats_kernel(H, th),
        out_shape=(jax.ShapeDtypeStruct((N, Cout, 1), jnp.float32),
                   jax.ShapeDtypeStruct((N, Cout, 1), jnp.float32)),
        grid=(N, T),
        in_specs=[x_spec, p_spec],
        out_specs=(acc_spec, acc_spec),
        compiler_params=pltpu.CompilerParams(
            dimension_semantics=("parallel", "arbitrary"),
            vmem_limit_bytes=_STREAM_VMEM_LIMIT),
    )(x, p1)

    # Fold the conv's zero-padding border analytically: padded conv pixels equal
    # the bias, so their hardswish value is the per-channel constant h below.
    s = jnp.sum(psum[:, :, 0], axis=0)       # (Cout,)
    sq = jnp.sum(psq[:, :, 0], axis=0)       # (Cout,)
    bb = b[:, 0]
    h = bb * jnp.clip(bb + 3.0, 0.0, 6.0) * (1.0 / 6.0)
    total = float(N * Hp * Wp)
    border_cnt = float(N * (Hp * Wp - H * W))
    mean = (s + border_cnt * h) / total
    # Single-pass E[x^2]-mean^2 (clamped at 0); the fused path uses the
    # better-conditioned centered form.
    var = jnp.maximum((sq + border_cnt * h * h) / total - mean * mean, 0.0)
    scale = gamma * jax.lax.rsqrt(var + BN_EPS)
    shift = beta - mean * scale
    border_val = jnp.maximum(h * scale + shift, 0.0)   # (Cout,)

    # Pass 2: recompute conv+hardswish per tile (cheaper than an HBM round trip
    # of x5 when Cin == Cout) and apply the folded BN affine + ReLU.
    p2 = jnp.concatenate(
        [w2, b, scale.reshape(Cout, 1), shift.reshape(Cout, 1)], axis=1)
    interior = pl.pallas_call(
        _apply_kernel,
        out_shape=jax.ShapeDtypeStruct((N, Cout, H, W), jnp.float32),
        grid=(N, T),
        in_specs=[x_spec, p_spec],
        out_specs=pl.BlockSpec((None, Cout, th, W), lambda n, t: (n, 0, t, 0)),
        compiler_params=pltpu.CompilerParams(
            dimension_semantics=("parallel", "parallel"),
            vmem_limit_bytes=_STREAM_VMEM_LIMIT),
    )(x, p2)

    # TODO(synk): this wrapper-side composition re-copies the output once; the
    # fused path above writes the padded border directly in-kernel and avoids it.
    out = jnp.broadcast_to(border_val.reshape(1, Cout, 1, 1), (N, Cout, Hp, Wp))
    return out.at[:, :, 1:H + 1, 1:W + 1].set(interior)


@partial(jax.jit, static_argnames=("force_streaming", "row_tile"))
def model_forward(x, conv_w, conv_b, bn_gamma, bn_beta, *,
                  force_streaming=False, row_tile=None):
    """Conv2d(Cin,Cout,1,padding=1) -> x*clip(x+3,0,6)/6 -> BatchNorm2d (training
    batch stats) -> ReLU.  Returns (N, Cout, H+2, W+2).  Note: running_mean /
    running_var updates (a PyTorch training-mode side effect) are not produced.
    """
    x = x.astype(jnp.float32)
    N, Cin, H, W = x.shape
    Cout = conv_w.shape[0]
    Hp, Wp = H + 2, W + 2

    w2 = conv_w.reshape(Cout, Cin).astype(jnp.float32)
    b = conv_b.reshape(Cout, 1).astype(jnp.float32)
    gamma = bn_gamma.reshape(Cout).astype(jnp.float32)
    beta = bn_beta.reshape(Cout).astype(jnp.float32)

    resident = (N * Cin * _padded_slab_bytes(H, W)
                + N * Cout * _padded_slab_bytes(Hp, Wp)
                + N * Cout * _padded_slab_bytes(H, W))
    if force_streaming or resident > _FUSED_VMEM_BUDGET:
        return _forward_streaming(x, w2, b, gamma, beta, row_tile)
    return _forward_fused(x, w2, b, gamma, beta)


def reference_forward(x, conv_w, conv_b, bn_gamma, bn_beta):
    """Pure-JAX reference mirroring the PyTorch module (BN training mode)."""
    N, Cin, H, W = x.shape
    Cout = conv_w.shape[0]
    x_pad = jnp.pad(x, ((0, 0), (0, 0), (1, 1), (1, 1)))
    w = conv_w.reshape(Cout, Cin)
    y = jnp.einsum('oc,nchw->nohw', w, x_pad,
                   precision=jax.lax.Precision.HIGHEST)
    y = y + conv_b.reshape(1, Cout, 1, 1)
    x5 = y * jnp.clip(y + 3.0, 0.0, 6.0) / 6.0
    mean = jnp.mean(x5, axis=(0, 2, 3), keepdims=True)
    var = jnp.mean((x5 - mean) ** 2, axis=(0, 2, 3), keepdims=True)
    xhat = (x5 - mean) * jax.lax.rsqrt(var + BN_EPS)
    out = xhat * bn_gamma.reshape(1, Cout, 1, 1) + bn_beta.reshape(1, Cout, 1, 1)
    return jnp.maximum(out, 0.0)


if __name__ == "__main__":
    key = jax.random.PRNGKey(0)
    kx, kw, kb, kg, kbt, kx2 = jax.random.split(key, 6)

    # Small shapes consistent with the module: Conv2d(3, 3, 1, padding=1), BN(3).
    N, Cin, H, W = 2, 3, 16, 16
    Cout = 3

    x = jax.random.normal(kx, (N, Cin, H, W), dtype=jnp.float32)
    fan_in = Cin * 1 * 1
    bound = 1.0 / (fan_in ** 0.5)
    conv_w = jax.random.uniform(kw, (Cout, Cin, 1, 1), jnp.float32, -bound, bound)
    conv_b = jax.random.uniform(kb, (Cout,), jnp.float32, -bound, bound)
    bn_gamma = 1.0 + 0.1 * jax.random.normal(kg, (Cout,), jnp.float32)
    bn_beta = 0.1 * jax.random.normal(kbt, (Cout,), jnp.float32)

    # Fused single-pallas_call path (everything VMEM-resident).
    out = jax.block_until_ready(model_forward(x, conv_w, conv_b, bn_gamma, bn_beta))
    ref = reference_forward(x, conv_w, conv_b, bn_gamma, bn_beta)
    assert out.shape == (N, Cout, H + 2, W + 2)
    if not jnp.allclose(out, ref, atol=1e-4, rtol=1e-4):
        raise AssertionError(
            f"fused path mismatch (max abs err {jnp.max(jnp.abs(out - ref))})")

    # Streaming two-pass fallback, forced, with a row tile that does not divide H
    # so boundary-tile masking is exercised as well.
    x2 = jax.random.normal(kx2, (2, Cin, 20, 24), dtype=jnp.float32)
    out2 = jax.block_until_ready(
        model_forward(x2, conv_w, conv_b, bn_gamma, bn_beta,
                      force_streaming=True, row_tile=8))
    ref2 = reference_forward(x2, conv_w, conv_b, bn_gamma, bn_beta)
    if not jnp.allclose(out2, ref2, atol=1e-4, rtol=1e-4):
        raise AssertionError(
            f"streaming path mismatch (max abs err {jnp.max(jnp.abs(out2 - ref2))})")

    print("KERNEL_OK")
</pallas_src>

<mosaic_0001>
module attributes {stable_mosaic.version = 11 : i64} {
  func.func @_fused_kernel(%arg0: i32, %arg1: memref<2x3x16x16xf32, #tpu.memory_space<vmem>>, %arg2: memref<3x7xf32, #tpu.memory_space<smem>>, %arg3: memref<2x3x18x18xf32, #tpu.memory_space<vmem>>, %arg4: memref<2x3x16x16xf32, #tpu.memory_space<vmem>>) attributes {dimension_semantics = [#tpu.dimension_semantics<arbitrary>], iteration_bounds = array<i64: 1>, scalar_prefetch = 0 : i64, scratch_operands = 1 : i64, tpu.core_type = #tpu.core_type<tc>, window_params = [{pipeline_mode = #tpu.pipeline_mode<synchronous>, transform_indices = @transform_0, window_bounds = array<i64: 2, 3, 16, 16>}, {transform_indices = @transform_1, window_bounds = array<i64: 3, 7>}, {pipeline_mode = #tpu.pipeline_mode<synchronous>, transform_indices = @transform_2, window_bounds = array<i64: 2, 3, 18, 18>}]} {
    %cst = arith.constant 0.000000e+00 : f32
    %0 = vector.broadcast %cst : f32 to vector<1x1xf32>
    %c0 = arith.constant 0 : index
    %c0_0 = arith.constant 0 : index
    %1 = memref.load %arg2[%c0, %c0_0] : memref<3x7xf32, #tpu.memory_space<smem>>
    %c0_1 = arith.constant 0 : index
    %c0_2 = arith.constant 0 : index
    %c0_3 = arith.constant 0 : index
    %c0_4 = arith.constant 0 : index
    %2 = vector.load %arg1[%c0_1, %c0_2, %c0_3, %c0_4] : memref<2x3x16x16xf32, #tpu.memory_space<vmem>>, vector<1x1x16x16xf32>
    %3 = vector.shape_cast %2 : vector<1x1x16x16xf32> to vector<16x16xf32>
    %4 = vector.broadcast %1 : f32 to vector<16x16xf32>
    %5 = arith.mulf %4, %3 : vector<16x16xf32>
    %c0_5 = arith.constant 0 : index
    %c1 = arith.constant 1 : index
    %6 = memref.load %arg2[%c0_5, %c1] : memref<3x7xf32, #tpu.memory_space<smem>>
    %c0_6 = arith.constant 0 : index
    %c1_7 = arith.constant 1 : index
    %c0_8 = arith.constant 0 : index
    %c0_9 = arith.constant 0 : index
    %7 = vector.load %arg1[%c0_6, %c1_7, %c0_8, %c0_9] : memref<2x3x16x16xf32, #tpu.memory_space<vmem>>, vector<1x1x16x16xf32>
    %8 = vector.shape_cast %7 : vector<1x1x16x16xf32> to vector<16x16xf32>
    %9 = vector.broadcast %6 : f32 to vector<16x16xf32>
    %10 = arith.mulf %9, %8 : vector<16x16xf32>
    %11 = arith.addf %5, %10 : vector<16x16xf32>
    %c0_10 = arith.constant 0 : index
    %c2 = arith.constant 2 : index
    %12 = memref.load %arg2[%c0_10, %c2] : memref<3x7xf32, #tpu.memory_space<smem>>
    %c0_11 = arith.constant 0 : index
    %c2_12 = arith.constant 2 : index
    %c0_13 = arith.constant 0 : index
    %c0_14 = arith.constant 0 : index
    %13 = vector.load %arg1[%c0_11, %c2_12, %c0_13, %c0_14] : memref<2x3x16x16xf32, #tpu.memory_space<vmem>>, vector<1x1x16x16xf32>
    %14 = vector.shape_cast %13 : vector<1x1x16x16xf32> to vector<16x16xf32>
    %15 = vector.broadcast %12 : f32 to vector<16x16xf32>
    %16 = arith.mulf %15, %14 : vector<16x16xf32>
    %17 = arith.addf %11, %16 : vector<16x16xf32>
    %c0_15 = arith.constant 0 : index
    %c3 = arith.constant 3 : index
    %18 = memref.load %arg2[%c0_15, %c3] : memref<3x7xf32, #tpu.memory_space<smem>>
    %19 = vector.broadcast %18 : f32 to vector<16x16xf32>
    %20 = arith.addf %17, %19 : vector<16x16xf32>
    %cst_16 = arith.constant 3.000000e+00 : f32
    %21 = vector.broadcast %cst_16 : f32 to vector<16x16xf32>
    %22 = arith.addf %20, %21 : vector<16x16xf32>
    %cst_17 = arith.constant 0.000000e+00 : f32
    %cst_18 = arith.constant 6.000000e+00 : f32
    %23 = vector.broadcast %cst_17 : f32 to vector<16x16xf32>
    %24 = arith.maximumf %23, %22 : vector<16x16xf32>
    %25 = vector.broadcast %cst_18 : f32 to vector<16x16xf32>
    %26 = arith.minimumf %25, %24 : vector<16x16xf32>
    %27 = arith.mulf %20, %26 : vector<16x16xf32>
    %cst_19 = arith.constant 0.166666672 : f32
    %28 = vector.broadcast %cst_19 : f32 to vector<16x16xf32>
    %29 = arith.mulf %27, %28 : vector<16x16xf32>
    %c0_20 = arith.constant 0 : index
    %c0_21 = arith.constant 0 : index
    %c0_22 = arith.constant 0 : index
    %c0_23 = arith.constant 0 : index
    %30 = vector.load %arg4[%c0_20, %c0_21, %c0_22, %c0_23] : memref<2x3x16x16xf32, #tpu.memory_space<vmem>>, vector<1x1x16x16xf32>
    %31 = vector.shape_cast %30 : vector<1x1x16x16xf32> to vector<16x16xf32>
    %32 = vector.shape_cast %29 : vector<16x16xf32> to vector<1x1x16x16xf32>
    tpu.vector_store %arg4[%c0_20, %c0_21, %c0_22, %c0_23], %32 {strides = array<i32>} : memref<2x3x16x16xf32, #tpu.memory_space<vmem>>, vector<1x1x16x16xf32>,
    %33 = vector.shape_cast %29 : vector<16x16xf32> to vector<1x16x16xf32>
    %cst_24 = arith.constant dense<0.000000e+00> : vector<1xf32>
    %34 = vector.multi_reduction <add>, %33, %cst_24 [1, 2] : vector<1x16x16xf32> to vector<1xf32>
    %35 = vector.shape_cast %34 : vector<1xf32> to vector<1x1x1xf32>
    %36 = vector.extract %35[0, 0, 0] : f32 from vector<1x1x1xf32>
    %37 = vector.broadcast %36 : f32 to vector<1x1xf32>
    %38 = arith.addf %0, %37 : vector<1x1xf32>
    %c0_25 = arith.constant 0 : index
    %c0_26 = arith.constant 0 : index
    %39 = memref.load %arg2[%c0_25, %c0_26] : memref<3x7xf32, #tpu.memory_space<smem>>
    %c1_27 = arith.constant 1 : index
    %c0_28 = arith.constant 0 : index
    %c0_29 = arith.constant 0 : index
    %c0_30 = arith.constant 0 : index
    %40 = vector.load %arg1[%c1_27, %c0_28, %c0_29, %c0_30] : memref<2x3x16x16xf32, #tpu.memory_space<vmem>>, vector<1x1x16x16xf32>
    %41 = vector.shape_cast %40 : vector<1x1x16x16xf32> to vector<16x16xf32>
    %42 = vector.broadcast %39 : f32 to vector<16x16xf32>
    %43 = arith.mulf %42, %41 : vector<16x16xf32>
    %c0_31 = arith.constant 0 : index
    %c1_32 = arith.constant 1 : index
    %44 = memref.load %arg2[%c0_31, %c1_32] : memref<3x7xf32, #tpu.memory_space<smem>>
    %c1_33 = arith.constant 1 : index
    %c1_34 = arith.constant 1 : index
    %c0_35 = arith.constant 0 : index
    %c0_36 = arith.constant 0 : index
    %45 = vector.load %arg1[%c1_33, %c1_34, %c0_35, %c0_36] : memref<2x3x16x16xf32, #tpu.memory_space<vmem>>, vector<1x1x16x16xf32>
    %46 = vector.shape_cast %45 : vector<1x1x16x16xf32> to vector<16x16xf32>
    %47 = vector.broadcast %44 : f32 to vector<16x16xf32>
    %48 = arith.mulf %47, %46 : vector<16x16xf32>
    %49 = arith.addf %43, %48 : vector<16x16xf32>
    %c0_37 = arith.constant 0 : index
    %c2_38 = arith.constant 2 : index
    %50 = memref.load %arg2[%c0_37, %c2_38] : memref<3x7xf32, #tpu.memory_space<smem>>
    %c1_39 = arith.constant 1 : index
    %c2_40 = arith.constant 2 : index
    %c0_41 = arith.constant 0 : index
    %c0_42 = arith.constant 0 : index
    %51 = vector.load %arg1[%c1_39, %c2_40, %c0_41, %c0_42] : memref<2x3x16x16xf32, #tpu.memory_space<vmem>>, vector<1x1x16x16xf32>
    %52 = vector.shape_cast %51 : vector<1x1x16x16xf32> to vector<16x16xf32>
    %53 = vector.broadcast %50 : f32 to vector<16x16xf32>
    %54 = arith.mulf %53, %52 : vector<16x16xf32>
    %55 = arith.addf %49, %54 : vector<16x16xf32>
    %c0_43 = arith.constant 0 : index
    %c3_44 = arith.constant 3 : index
    %56 = memref.load %arg2[%c0_43, %c3_44] : memref<3x7xf32, #tpu.memory_space<smem>>
    %57 = vector.broadcast %56 : f32 to vector<16x16xf32>
    %58 = arith.addf %55, %57 : vector<16x16xf32>
    %cst_45 = arith.constant 3.000000e+00 : f32
    %59 = vector.broadcast %cst_45 : f32 to vector<16x16xf32>
    %60 = arith.addf %58, %59 : vector<16x16xf32>
    %cst_46 = arith.constant 0.000000e+00 : f32
    %cst_47 = arith.constant 6.000000e+00 : f32
    %61 = vector.broadcast %cst_46 : f32 to vector<16x16xf32>
    %62 = arith.maximumf %61, %60 : vector<16x16xf32>
    %63 = vector.broadcast %cst_47 : f32 to vector<16x16xf32>
    %64 = arith.minimumf %63, %62 : vector<16x16xf32>
    %65 = arith.mulf %58, %64 : vector<16x16xf32>
    %cst_48 = arith.constant 0.166666672 : f32
    %66 = vector.broadcast %cst_48 : f32 to vector<16x16xf32>
    %67 = arith.mulf %65, %66 : vector<16x16xf32>
    %c1_49 = arith.constant 1 : index
    %c0_50 = arith.constant 0 : index
    %c0_51 = arith.constant 0 : index
    %c0_52 = arith.constant 0 : index
    %68 = vector.load %arg4[%c1_49, %c0_50, %c0_51, %c0_52] : memref<2x3x16x16xf32, #tpu.memory_space<vmem>>, vector<1x1x16x16xf32>
    %69 = vector.shape_cast %68 : vector<1x1x16x16xf32> to vector<16x16xf32>
    %70 = vector.shape_cast %67 : vector<16x16xf32> to vector<1x1x16x16xf32>
    tpu.vector_store %arg4[%c1_49, %c0_50, %c0_51, %c0_52], %70 {strides = array<i32>} : memref<2x3x16x16xf32, #tpu.memory_space<vmem>>, vector<1x1x16x16xf32>,
    %71 = vector.shape_cast %67 : vector<16x16xf32> to vector<1x16x16xf32>
    %cst_53 = arith.constant dense<0.000000e+00> : vector<1xf32>
    %72 = vector.multi_reduction <add>, %71, %cst_53 [1, 2] : vector<1x16x16xf32> to vector<1xf32>
    %73 = vector.shape_cast %72 : vector<1xf32> to vector<1x1x1xf32>
    %74 = vector.extract %73[0, 0, 0] : f32 from vector<1x1x1xf32>
    %75 = vector.broadcast %74 : f32 to vector<1x1xf32>
    %76 = arith.addf %38, %75 : vector<1x1xf32>
    %cst_54 = arith.constant 0.000000e+00 : f32
    %77 = vector.broadcast %cst_54 : f32 to vector<1x1xf32>
    %c1_55 = arith.constant 1 : index
    %c0_56 = arith.constant 0 : index
    %78 = memref.load %arg2[%c1_55, %c0_56] : memref<3x7xf32, #tpu.memory_space<smem>>
    %c0_57 = arith.constant 0 : index
    %c0_58 = arith.constant 0 : index
    %c0_59 = arith.constant 0 : index
    %c0_60 = arith.constant 0 : index
    %79 = vector.load %arg1[%c0_57, %c0_58, %c0_59, %c0_60] : memref<2x3x16x16xf32, #tpu.memory_space<vmem>>, vector<1x1x16x16xf32>
    %80 = vector.shape_cast %79 : vector<1x1x16x16xf32> to vector<16x16xf32>
    %81 = vector.broadcast %78 : f32 to vector<16x16xf32>
    %82 = arith.mulf %81, %80 : vector<16x16xf32>
    %c1_61 = arith.constant 1 : index
    %c1_62 = arith.constant 1 : index
    %83 = memref.load %arg2[%c1_61, %c1_62] : memref<3x7xf32, #tpu.memory_space<smem>>
    %c0_63 = arith.constant 0 : index
    %c1_64 = arith.constant 1 : index
    %c0_65 = arith.constant 0 : index
    %c0_66 = arith.constant 0 : index
    %84 = vector.load %arg1[%c0_63, %c1_64, %c0_65, %c0_66] : memref<2x3x16x16xf32, #tpu.memory_space<vmem>>, vector<1x1x16x16xf32>
    %85 = vector.shape_cast %84 : vector<1x1x16x16xf32> to vector<16x16xf32>
    %86 = vector.broadcast %83 : f32 to vector<16x16xf32>
    %87 = arith.mulf %86, %85 : vector<16x16xf32>
    %88 = arith.addf %82, %87 : vector<16x16xf32>
    %c1_67 = arith.constant 1 : index
    %c2_68 = arith.constant 2 : index
    %89 = memref.load %arg2[%c1_67, %c2_68] : memref<3x7xf32, #tpu.memory_space<smem>>
    %c0_69 = arith.constant 0 : index
    %c2_70 = arith.constant 2 : index
    %c0_71 = arith.constant 0 : index
    %c0_72 = arith.constant 0 : index
    %90 = vector.load %arg1[%c0_69, %c2_70, %c0_71, %c0_72] : memref<2x3x16x16xf32, #tpu.memory_space<vmem>>, vector<1x1x16x16xf32>
    %91 = vector.shape_cast %90 : vector<1x1x16x16xf32> to vector<16x16xf32>
    %92 = vector.broadcast %89 : f32 to vector<16x16xf32>
    %93 = arith.mulf %92, %91 : vector<16x16xf32>
    %94 = arith.addf %88, %93 : vector<16x16xf32>
    %c1_73 = arith.constant 1 : index
    %c3_74 = arith.constant 3 : index
    %95 = memref.load %arg2[%c1_73, %c3_74] : memref<3x7xf32, #tpu.memory_space<smem>>
    %96 = vector.broadcast %95 : f32 to vector<16x16xf32>
    %97 = arith.addf %94, %96 : vector<16x16xf32>
    %cst_75 = arith.constant 3.000000e+00 : f32
    %98 = vector.broadcast %cst_75 : f32 to vector<16x16xf32>
    %99 = arith.addf %97, %98 : vector<16x16xf32>
    %cst_76 = arith.constant 0.000000e+00 : f32
    %cst_77 = arith.constant 6.000000e+00 : f32
    %100 = vector.broadcast %cst_76 : f32 to vector<16x16xf32>
    %101 = arith.maximumf %100, %99 : vector<16x16xf32>
    %102 = vector.broadcast %cst_77 : f32 to vector<16x16xf32>
    %103 = arith.minimumf %102, %101 : vector<16x16xf32>
    %104 = arith.mulf %97, %103 : vector<16x16xf32>
    %cst_78 = arith.constant 0.166666672 : f32
    %105 = vector.broadcast %cst_78 : f32 to vector<16x16xf32>
    %106 = arith.mulf %104, %105 : vector<16x16xf32>
    %c0_79 = arith.constant 0 : index
    %c1_80 = arith.constant 1 : index
    %c0_81 = arith.constant 0 : index
    %c0_82 = arith.constant 0 : index
    %107 = vector.load %arg4[%c0_79, %c1_80, %c0_81, %c0_82] : memref<2x3x16x16xf32, #tpu.memory_space<vmem>>, vector<1x1x16x16xf32>
    %108 = vector.shape_cast %107 : vector<1x1x16x16xf32> to vector<16x16xf32>
    %109 = vector.shape_cast %106 : vector<16x16xf32> to vector<1x1x16x16xf32>
    tpu.vector_store %arg4[%c0_79, %c1_80, %c0_81, %c0_82], %109 {strides = array<i32>} : memref<2x3x16x16xf32, #tpu.memory_space<vmem>>, vector<1x1x16x16xf32>,
    %110 = vector.shape_cast %106 : vector<16x16xf32> to vector<1x16x16xf32>
    %cst_83 = arith.constant dense<0.000000e+00> : vector<1xf32>
    %111 = vector.multi_reduction <add>, %110, %cst_83 [1, 2] : vector<1x16x16xf32> to vector<1xf32>
    %112 = vector.shape_cast %111 : vector<1xf32> to vector<1x1x1xf32>
    %113 = vector.extract %112[0, 0, 0] : f32 from vector<1x1x1xf32>
    %114 = vector.broadcast %113 : f32 to vector<1x1xf32>
    %115 = arith.addf %77, %114 : vector<1x1xf32>
    %c1_84 = arith.constant 1 : index
    %c0_85 = arith.constant 0 : index
    %116 = memref.load %arg2[%c1_84, %c0_85] : memref<3x7xf32, #tpu.memory_space<smem>>
    %c1_86 = arith.constant 1 : index
    %c0_87 = arith.constant 0 : index
    %c0_88 = arith.constant 0 : index
    %c0_89 = arith.constant 0 : index
    %117 = vector.load %arg1[%c1_86, %c0_87, %c0_88, %c0_89] : memref<2x3x16x16xf32, #tpu.memory_space<vmem>>, vector<1x1x16x16xf32>
    %118 = vector.shape_cast %117 : vector<1x1x16x16xf32> to vector<16x16xf32>
    %119 = vector.broadcast %116 : f32 to vector<16x16xf32>
    %120 = arith.mulf %119, %118 : vector<16x16xf32>
    %c1_90 = arith.constant 1 : index
    %c1_91 = arith.constant 1 : index
    %121 = memref.load %arg2[%c1_90, %c1_91] : memref<3x7xf32, #tpu.memory_space<smem>>
    %c1_92 = arith.constant 1 : index
    %c1_93 = arith.constant 1 : index
    %c0_94 = arith.constant 0 : index
    %c0_95 = arith.constant 0 : index
    %122 = vector.load %arg1[%c1_92, %c1_93, %c0_94, %c0_95] : memref<2x3x16x16xf32, #tpu.memory_space<vmem>>, vector<1x1x16x16xf32>
    %123 = vector.shape_cast %122 : vector<1x1x16x16xf32> to vector<16x16xf32>
    %124 = vector.broadcast %121 : f32 to vector<16x16xf32>
    %125 = arith.mulf %124, %123 : vector<16x16xf32>
    %126 = arith.addf %120, %125 : vector<16x16xf32>
    %c1_96 = arith.constant 1 : index
    %c2_97 = arith.constant 2 : index
    %127 = memref.load %arg2[%c1_96, %c2_97] : memref<3x7xf32, #tpu.memory_space<smem>>
    %c1_98 = arith.constant 1 : index
    %c2_99 = arith.constant 2 : index
    %c0_100 = arith.constant 0 : index
    %c0_101 = arith.constant 0 : index
    %128 = vector.load %arg1[%c1_98, %c2_99, %c0_100, %c0_101] : memref<2x3x16x16xf32, #tpu.memory_space<vmem>>, vector<1x1x16x16xf32>
    %129 = vector.shape_cast %128 : vector<1x1x16x16xf32> to vector<16x16xf32>
    %130 = vector.broadcast %127 : f32 to vector<16x16xf32>
    %131 = arith.mulf %130, %129 : vector<16x16xf32>
    %132 = arith.addf %126, %131 : vector<16x16xf32>
    %c1_102 = arith.constant 1 : index
    %c3_103 = arith.constant 3 : index
    %133 = memref.load %arg2[%c1_102, %c3_103] : memref<3x7xf32, #tpu.memory_space<smem>>
    %134 = vector.broadcast %133 : f32 to vector<16x16xf32>
    %135 = arith.addf %132, %134 : vector<16x16xf32>
    %cst_104 = arith.constant 3.000000e+00 : f32
    %136 = vector.broadcast %cst_104 : f32 to vector<16x16xf32>
    %137 = arith.addf %135, %136 : vector<16x16xf32>
    %cst_105 = arith.constant 0.000000e+00 : f32
    %cst_106 = arith.constant 6.000000e+00 : f32
    %138 = vector.broadcast %cst_105 : f32 to vector<16x16xf32>
    %139 = arith.maximumf %138, %137 : vector<16x16xf32>
    %140 = vector.broadcast %cst_106 : f32 to vector<16x16xf32>
    %141 = arith.minimumf %140, %139 : vector<16x16xf32>
    %142 = arith.mulf %135, %141 : vector<16x16xf32>
    %cst_107 = arith.constant 0.166666672 : f32
    %143 = vector.broadcast %cst_107 : f32 to vector<16x16xf32>
    %144 = arith.mulf %142, %143 : vector<16x16xf32>
    %c1_108 = arith.constant 1 : index
    %c1_109 = arith.constant 1 : index
    %c0_110 = arith.constant 0 : index
    %c0_111 = arith.constant 0 : index
    %145 = vector.load %arg4[%c1_108, %c1_109, %c0_110, %c0_111] : memref<2x3x16x16xf32, #tpu.memory_space<vmem>>, vector<1x1x16x16xf32>
    %146 = vector.shape_cast %145 : vector<1x1x16x16xf32> to vector<16x16xf32>
    %147 = vector.shape_cast %144 : vector<16x16xf32> to vector<1x1x16x16xf32>
    tpu.vector_store %arg4[%c1_108, %c1_109, %c0_110, %c0_111], %147 {strides = array<i32>} : memref<2x3x16x16xf32, #tpu.memory_space<vmem>>, vector<1x1x16x16xf32>,
    %148 = vector.shape_cast %144 : vector<16x16xf32> to vector<1x16x16xf32>
    %cst_112 = arith.constant dense<0.000000e+00> : vector<1xf32>
    %149 = vector.multi_reduction <add>, %148, %cst_112 [1, 2] : vector<1x16x16xf32> to vector<1xf32>
    %150 = vector.shape_cast %149 : vector<1xf32> to vector<1x1x1xf32>
    %151 = vector.extract %150[0, 0, 0] : f32 from vector<1x1x1xf32>
    %152 = vector.broadcast %151 : f32 to vector<1x1xf32>
    %153 = arith.addf %115, %152 : vector<1x1xf32>
    %cst_113 = arith.constant 0.000000e+00 : f32
    %154 = vector.broadcast %cst_113 : f32 to vector<1x1xf32>
    %c2_114 = arith.constant 2 : index
    %c0_115 = arith.constant 0 : index
    %155 = memref.load %arg2[%c2_114, %c0_115] : memref<3x7xf32, #tpu.memory_space<smem>>
    %c0_116 = arith.constant 0 : index
    %c0_117 = arith.constant 0 : index
    %c0_118 = arith.constant 0 : index
    %c0_119 = arith.constant 0 : index
    %156 = vector.load %arg1[%c0_116, %c0_117, %c0_118, %c0_119] : memref<2x3x16x16xf32, #tpu.memory_space<vmem>>, vector<1x1x16x16xf32>
    %157 = vector.shape_cast %156 : vector<1x1x16x16xf32> to vector<16x16xf32>
    %158 = vector.broadcast %155 : f32 to vector<16x16xf32>
    %159 = arith.mulf %158, %157 : vector<16x16xf32>
    %c2_120 = arith.constant 2 : index
    %c1_121 = arith.constant 1 : index
    %160 = memref.load %arg2[%c2_120, %c1_121] : memref<3x7xf32, #tpu.memory_space<smem>>
    %c0_122 = arith.constant 0 : index
    %c1_123 = arith.constant 1 : index
    %c0_124 = arith.constant 0 : index
    %c0_125 = arith.constant 0 : index
    %161 = vector.load %arg1[%c0_122, %c1_123, %c0_124, %c0_125] : memref<2x3x16x16xf32, #tpu.memory_space<vmem>>, vector<1x1x16x16xf32>
    %162 = vector.shape_cast %161 : vector<1x1x16x16xf32> to vector<16x16xf32>
    %163 = vector.broadcast %160 : f32 to vector<16x16xf32>
    %164 = arith.mulf %163, %162 : vector<16x16xf32>
    %165 = arith.addf %159, %164 : vector<16x16xf32>
    %c2_126 = arith.constant 2 : index
    %c2_127 = arith.constant 2 : index
    %166 = memref.load %arg2[%c2_126, %c2_127] : memref<3x7xf32, #tpu.memory_space<smem>>
    %c0_128 = arith.constant 0 : index
    %c2_129 = arith.constant 2 : index
    %c0_130 = arith.constant 0 : index
    %c0_131 = arith.constant 0 : index
    %167 = vector.load %arg1[%c0_128, %c2_129, %c0_130, %c0_131] : memref<2x3x16x16xf32, #tpu.memory_space<vmem>>, vector<1x1x16x16xf32>
    %168 = vector.shape_cast %167 : vector<1x1x16x16xf32> to vector<16x16xf32>
    %169 = vector.broadcast %166 : f32 to vector<16x16xf32>
    %170 = arith.mulf %169, %168 : vector<16x16xf32>
    %171 = arith.addf %165, %170 : vector<16x16xf32>
    %c2_132 = arith.constant 2 : index
    %c3_133 = arith.constant 3 : index
    %172 = memref.load %arg2[%c2_132, %c3_133] : memref<3x7xf32, #tpu.memory_space<smem>>
    %173 = vector.broadcast %172 : f32 to vector<16x16xf32>
    %174 = arith.addf %171, %173 : vector<16x16xf32>
    %cst_134 = arith.constant 3.000000e+00 : f32
    %175 = vector.broadcast %cst_134 : f32 to vector<16x16xf32>
    %176 = arith.addf %174, %175 : vector<16x16xf32>
    %cst_135 = arith.constant 0.000000e+00 : f32
    %cst_136 = arith.constant 6.000000e+00 : f32
    %177 = vector.broadcast %cst_135 : f32 to vector<16x16xf32>
    %178 = arith.maximumf %177, %176 : vector<16x16xf32>
    %179 = vector.broadcast %cst_136 : f32 to vector<16x16xf32>
    %180 = arith.minimumf %179, %178 : vector<16x16xf32>
    %181 = arith.mulf %174, %180 : vector<16x16xf32>
    %cst_137 = arith.constant 0.166666672 : f32
    %182 = vector.broadcast %cst_137 : f32 to vector<16x16xf32>
    %183 = arith.mulf %181, %182 : vector<16x16xf32>
    %c0_138 = arith.constant 0 : index
    %c2_139 = arith.constant 2 : index
    %c0_140 = arith.constant 0 : index
    %c0_141 = arith.constant 0 : index
    %184 = vector.load %arg4[%c0_138, %c2_139, %c0_140, %c0_141] : memref<2x3x16x16xf32, #tpu.memory_space<vmem>>, vector<1x1x16x16xf32>
    %185 = vector.shape_cast %184 : vector<1x1x16x16xf32> to vector<16x16xf32>
    %186 = vector.shape_cast %183 : vector<16x16xf32> to vector<1x1x16x16xf32>
    tpu.vector_store %arg4[%c0_138, %c2_139, %c0_140, %c0_141], %186 {strides = array<i32>} : memref<2x3x16x16xf32, #tpu.memory_space<vmem>>, vector<1x1x16x16xf32>,
    %187 = vector.shape_cast %183 : vector<16x16xf32> to vector<1x16x16xf32>
    %cst_142 = arith.constant dense<0.000000e+00> : vector<1xf32>
    %188 = vector.multi_reduction <add>, %187, %cst_142 [1, 2] : vector<1x16x16xf32> to vector<1xf32>
    %189 = vector.shape_cast %188 : vector<1xf32> to vector<1x1x1xf32>
    %190 = vector.extract %189[0, 0, 0] : f32 from vector<1x1x1xf32>
    %191 = vector.broadcast %190 : f32 to vector<1x1xf32>
    %192 = arith.addf %154, %191 : vector<1x1xf32>
    %c2_143 = arith.constant 2 : index
    %c0_144 = arith.constant 0 : index
    %193 = memref.load %arg2[%c2_143, %c0_144] : memref<3x7xf32, #tpu.memory_space<smem>>
    %c1_145 = arith.constant 1 : index
    %c0_146 = arith.constant 0 : index
    %c0_147 = arith.constant 0 : index
    %c0_148 = arith.constant 0 : index
    %194 = vector.load %arg1[%c1_145, %c0_146, %c0_147, %c0_148] : memref<2x3x16x16xf32, #tpu.memory_space<vmem>>, vector<1x1x16x16xf32>
    %195 = vector.shape_cast %194 : vector<1x1x16x16xf32> to vector<16x16xf32>
    %196 = vector.broadcast %193 : f32 to vector<16x16xf32>
    %197 = arith.mulf %196, %195 : vector<16x16xf32>
    %c2_149 = arith.constant 2 : index
    %c1_150 = arith.constant 1 : index
    %198 = memref.load %arg2[%c2_149, %c1_150] : memref<3x7xf32, #tpu.memory_space<smem>>
    %c1_151 = arith.constant 1 : index
    %c1_152 = arith.constant 1 : index
    %c0_153 = arith.constant 0 : index
    %c0_154 = arith.constant 0 : index
    %199 = vector.load %arg1[%c1_151, %c1_152, %c0_153, %c0_154] : memref<2x3x16x16xf32, #tpu.memory_space<vmem>>, vector<1x1x16x16xf32>
    %200 = vector.shape_cast %199 : vector<1x1x16x16xf32> to vector<16x16xf32>
    %201 = vector.broadcast %198 : f32 to vector<16x16xf32>
    %202 = arith.mulf %201, %200 : vector<16x16xf32>
    %203 = arith.addf %197, %202 : vector<16x16xf32>
    %c2_155 = arith.constant 2 : index
    %c2_156 = arith.constant 2 : index
    %204 = memref.load %arg2[%c2_155, %c2_156] : memref<3x7xf32, #tpu.memory_space<smem>>
    %c1_157 = arith.constant 1 : index
    %c2_158 = arith.constant 2 : index
    %c0_159 = arith.constant 0 : index
    %c0_160 = arith.constant 0 : index
    %205 = vector.load %arg1[%c1_157, %c2_158, %c0_159, %c0_160] : memref<2x3x16x16xf32, #tpu.memory_space<vmem>>, vector<1x1x16x16xf32>
    %206 = vector.shape_cast %205 : vector<1x1x16x16xf32> to vector<16x16xf32>
    %207 = vector.broadcast %204 : f32 to vector<16x16xf32>
    %208 = arith.mulf %207, %206 : vector<16x16xf32>
    %209 = arith.addf %203, %208 : vector<16x16xf32>
    %c2_161 = arith.constant 2 : index
    %c3_162 = arith.constant 3 : index
    %210 = memref.load %arg2[%c2_161, %c3_162] : memref<3x7xf32, #tpu.memory_space<smem>>
    %211 = vector.broadcast %210 : f32 to vector<16x16xf32>
    %212 = arith.addf %209, %211 : vector<16x16xf32>
    %cst_163 = arith.constant 3.000000e+00 : f32
    %213 = vector.broadcast %cst_163 : f32 to vector<16x16xf32>
    %214 = arith.addf %212, %213 : vector<16x16xf32>
    %cst_164 = arith.constant 0.000000e+00 : f32
    %cst_165 = arith.constant 6.000000e+00 : f32
    %215 = vector.broadcast %cst_164 : f32 to vector<16x16xf32>
    %216 = arith.maximumf %215, %214 : vector<16x16xf32>
    %217 = vector.broadcast %cst_165 : f32 to vector<16x16xf32>
    %218 = arith.minimumf %217, %216 : vector<16x16xf32>
    %219 = arith.mulf %212, %218 : vector<16x16xf32>
    %cst_166 = arith.constant 0.166666672 : f32
    %220 = vector.broadcast %cst_166 : f32 to vector<16x16xf32>
    %221 = arith.mulf %219, %220 : vector<16x16xf32>
    %c1_167 = arith.constant 1 : index
    %c2_168 = arith.constant 2 : index
    %c0_169 = arith.constant 0 : index
    %c0_170 = arith.constant 0 : index
    %222 = vector.load %arg4[%c1_167, %c2_168, %c0_169, %c0_170] : memref<2x3x16x16xf32, #tpu.memory_space<vmem>>, vector<1x1x16x16xf32>
    %223 = vector.shape_cast %222 : vector<1x1x16x16xf32> to vector<16x16xf32>
    %224 = vector.shape_cast %221 : vector<16x16xf32> to vector<1x1x16x16xf32>
    tpu.vector_store %arg4[%c1_167, %c2_168, %c0_169, %c0_170], %224 {strides = array<i32>} : memref<2x3x16x16xf32, #tpu.memory_space<vmem>>, vector<1x1x16x16xf32>,
    %225 = vector.shape_cast %221 : vector<16x16xf32> to vector<1x16x16xf32>
    %cst_171 = arith.constant dense<0.000000e+00> : vector<1xf32>
    %226 = vector.multi_reduction <add>, %225, %cst_171 [1, 2] : vector<1x16x16xf32> to vector<1xf32>
    %227 = vector.shape_cast %226 : vector<1xf32> to vector<1x1x1xf32>
    %228 = vector.extract %227[0, 0, 0] : f32 from vector<1x1x1xf32>
    %229 = vector.broadcast %228 : f32 to vector<1x1xf32>
    %230 = arith.addf %192, %229 : vector<1x1xf32>
    %c0_172 = arith.constant 0 : index
    %c6 = arith.constant 6 : index
    %231 = memref.load %arg2[%c0_172, %c6] : memref<3x7xf32, #tpu.memory_space<smem>>
    %c0_173 = arith.constant 0 : index
    %c4 = arith.constant 4 : index
    %232 = memref.load %arg2[%c0_173, %c4] : memref<3x7xf32, #tpu.memory_space<smem>>
    %c0_174 = arith.constant 0 : index
    %c5 = arith.constant 5 : index
    %233 = memref.load %arg2[%c0_174, %c5] : memref<3x7xf32, #tpu.memory_space<smem>>
    %cst_175 = arith.constant 1.360000e+02 : f32
    %234 = arith.mulf %cst_175, %231 : f32
    %235 = vector.broadcast %234 : f32 to vector<1x1xf32>
    %236 = arith.addf %76, %235 : vector<1x1xf32>
    %cst_176 = arith.constant 0.00154320989 : f32
    %237 = vector.broadcast %cst_176 : f32 to vector<1x1xf32>
    %238 = arith.mulf %236, %237 : vector<1x1xf32>
    %cst_177 = arith.constant 0.000000e+00 : f32
    %239 = vector.broadcast %cst_177 : f32 to vector<1x1xf32>
    %c0_178 = arith.constant 0 : index
    %c0_179 = arith.constant 0 : index
    %c0_180 = arith.constant 0 : index
    %c0_181 = arith.constant 0 : index
    %240 = vector.load %arg4[%c0_178, %c0_179, %c0_180, %c0_181] : memref<2x3x16x16xf32, #tpu.memory_space<vmem>>, vector<1x1x16x16xf32>
    %241 = vector.shape_cast %240 : vector<1x1x16x16xf32> to vector<16x16xf32>
    %242 = vector.broadcast %238 : vector<1x1xf32> to vector<16x16xf32>
    %243 = arith.subf %241, %242 : vector<16x16xf32>
    %244 = arith.mulf %243, %243 : vector<16x16xf32>
    %245 = vector.shape_cast %244 : vector<16x16xf32> to vector<1x16x16xf32>
    %cst_182 = arith.constant dense<0.000000e+00> : vector<1xf32>
    %246 = vector.multi_reduction <add>, %245, %cst_182 [1, 2] : vector<1x16x16xf32> to vector<1xf32>
    %247 = vector.shape_cast %246 : vector<1xf32> to vector<1x1x1xf32>
    %248 = vector.extract %247[0, 0, 0] : f32 from vector<1x1x1xf32>
    %249 = vector.broadcast %248 : f32 to vector<1x1xf32>
    %250 = arith.addf %239, %249 : vector<1x1xf32>
    %c1_183 = arith.constant 1 : index
    %c0_184 = arith.constant 0 : index
    %c0_185 = arith.constant 0 : index
    %c0_186 = arith.constant 0 : index
    %251 = vector.load %arg4[%c1_183, %c0_184, %c0_185, %c0_186] : memref<2x3x16x16xf32, #tpu.memory_space<vmem>>, vector<1x1x16x16xf32>
    %252 = vector.shape_cast %251 : vector<1x1x16x16xf32> to vector<16x16xf32>
    %253 = vector.broadcast %238 : vector<1x1xf32> to vector<16x16xf32>
    %254 = arith.subf %252, %253 : vector<16x16xf32>
    %255 = arith.mulf %254, %254 : vector<16x16xf32>
    %256 = vector.shape_cast %255 : vector<16x16xf32> to vector<1x16x16xf32>
    %cst_187 = arith.constant dense<0.000000e+00> : vector<1xf32>
    %257 = vector.multi_reduction <add>, %256, %cst_187 [1, 2] : vector<1x16x16xf32> to vector<1xf32>
    %258 = vector.shape_cast %257 : vector<1xf32> to vector<1x1x1xf32>
    %259 = vector.extract %258[0, 0, 0] : f32 from vector<1x1x1xf32>
    %260 = vector.broadcast %259 : f32 to vector<1x1xf32>
    %261 = arith.addf %250, %260 : vector<1x1xf32>
    %262 = vector.broadcast %231 : f32 to vector<1x1xf32>
    %263 = arith.subf %262, %238 : vector<1x1xf32>
    %cst_188 = arith.constant 1.360000e+02 : f32
    %264 = vector.broadcast %cst_188 : f32 to vector<1x1xf32>
    %265 = arith.mulf %264, %263 : vector<1x1xf32>
    %266 = vector.broadcast %231 : f32 to vector<1x1xf32>
    %267 = arith.subf %266, %238 : vector<1x1xf32>
    %268 = arith.mulf %265, %267 : vector<1x1xf32>
    %269 = arith.addf %261, %268 : vector<1x1xf32>
    %cst_189 = arith.constant 0.00154320989 : f32
    %270 = vector.broadcast %cst_189 : f32 to vector<1x1xf32>
    %271 = arith.mulf %269, %270 : vector<1x1xf32>
    %cst_190 = arith.constant 9.99999974E-6 : f32
    %272 = vector.broadcast %cst_190 : f32 to vector<1x1xf32>
    %273 = arith.addf %271, %272 : vector<1x1xf32>
    %274 = math.rsqrt %273 : vector<1x1xf32>
    %275 = vector.broadcast %232 : f32 to vector<1x1xf32>
    %276 = arith.mulf %275, %274 : vector<1x1xf32>
    %277 = arith.mulf %238, %276 : vector<1x1xf32>
    %278 = vector.broadcast %233 : f32 to vector<1x1xf32>
    %279 = arith.subf %278, %277 : vector<1x1xf32>
    %280 = vector.broadcast %231 : f32 to vector<1x1xf32>
    %281 = arith.mulf %280, %276 : vector<1x1xf32>
    %282 = arith.addf %281, %279 : vector<1x1xf32>
    %cst_191 = arith.constant 0.000000e+00 : f32
    %283 = vector.broadcast %cst_191 : f32 to vector<1x1xf32>
    %284 = arith.maximumf %282, %283 : vector<1x1xf32>
    %285 = vector.shape_cast %284 : vector<1x1xf32> to vector<1x1xf32>
    %286 = vector.broadcast %285 : vector<1x1xf32> to vector<18x18xf32>
    %c0_192 = arith.constant 0 : index
    %c0_193 = arith.constant 0 : index
    %c0_194 = arith.constant 0 : index
    %c0_195 = arith.constant 0 : index
    %287 = vector.load %arg3[%c0_192, %c0_193, %c0_194, %c0_195] : memref<2x3x18x18xf32, #tpu.memory_space<vmem>>, vector<1x1x18x18xf32>
    %288 = vector.shape_cast %287 : vector<1x1x18x18xf32> to vector<18x18xf32>
    %289 = vector.shape_cast %286 : vector<18x18xf32> to vector<1x1x18x18xf32>
    tpu.vector_store %arg3[%c0_192, %c0_193, %c0_194, %c0_195], %289 {strides = array<i32>} : memref<2x3x18x18xf32, #tpu.memory_space<vmem>>, vector<1x1x18x18xf32>,
    %c0_196 = arith.constant 0 : index
    %c0_197 = arith.constant 0 : index
    %c0_198 = arith.constant 0 : index
    %c0_199 = arith.constant 0 : index
    %290 = vector.load %arg4[%c0_196, %c0_197, %c0_198, %c0_199] : memref<2x3x16x16xf32, #tpu.memory_space<vmem>>, vector<1x1x16x16xf32>
    %291 = vector.shape_cast %290 : vector<1x1x16x16xf32> to vector<16x16xf32>
    %292 = vector.broadcast %276 : vector<1x1xf32> to vector<16x16xf32>
    %293 = arith.mulf %291, %292 : vector<16x16xf32>
    %294 = vector.broadcast %279 : vector<1x1xf32> to vector<16x16xf32>
    %295 = arith.addf %293, %294 : vector<16x16xf32>
    %cst_200 = arith.constant 0.000000e+00 : f32
    %296 = vector.broadcast %cst_200 : f32 to vector<16x16xf32>
    %297 = arith.maximumf %295, %296 : vector<16x16xf32>
    %c0_201 = arith.constant 0 : index
    %c0_202 = arith.constant 0 : index
    %c1_203 = arith.constant 1 : index
    %c1_204 = arith.constant 1 : index
    %298 = vector.load %arg3[%c0_201, %c0_202, %c1_203, %c1_204] : memref<2x3x18x18xf32, #tpu.memory_space<vmem>>, vector<1x1x16x16xf32>
    %299 = vector.shape_cast %298 : vector<1x1x16x16xf32> to vector<16x16xf32>
    %300 = vector.shape_cast %297 : vector<16x16xf32> to vector<1x1x16x16xf32>
    tpu.vector_store %arg3[%c0_201, %c0_202, %c1_203, %c1_204], %300 {strides = array<i32>} : memref<2x3x18x18xf32, #tpu.memory_space<vmem>>, vector<1x1x16x16xf32>,
    %c1_205 = arith.constant 1 : index
    %c0_206 = arith.constant 0 : index
    %c0_207 = arith.constant 0 : index
    %c0_208 = arith.constant 0 : index
    %301 = vector.load %arg3[%c1_205, %c0_206, %c0_207, %c0_208] : memref<2x3x18x18xf32, #tpu.memory_space<vmem>>, vector<1x1x18x18xf32>
    %302 = vector.shape_cast %301 : vector<1x1x18x18xf32> to vector<18x18xf32>
    %303 = vector.shape_cast %286 : vector<18x18xf32> to vector<1x1x18x18xf32>
    tpu.vector_store %arg3[%c1_205, %c0_206, %c0_207, %c0_208], %303 {strides = array<i32>} : memref<2x3x18x18xf32, #tpu.memory_space<vmem>>, vector<1x1x18x18xf32>,
    %c1_209 = arith.constant 1 : index
    %c0_210 = arith.constant 0 : index
    %c0_211 = arith.constant 0 : index
    %c0_212 = arith.constant 0 : index
    %304 = vector.load %arg4[%c1_209, %c0_210, %c0_211, %c0_212] : memref<2x3x16x16xf32, #tpu.memory_space<vmem>>, vector<1x1x16x16xf32>
    %305 = vector.shape_cast %304 : vector<1x1x16x16xf32> to vector<16x16xf32>
    %306 = vector.broadcast %276 : vector<1x1xf32> to vector<16x16xf32>
    %307 = arith.mulf %305, %306 : vector<16x16xf32>
    %308 = vector.broadcast %279 : vector<1x1xf32> to vector<16x16xf32>
    %309 = arith.addf %307, %308 : vector<16x16xf32>
    %cst_213 = arith.constant 0.000000e+00 : f32
    %310 = vector.broadcast %cst_213 : f32 to vector<16x16xf32>
    %311 = arith.maximumf %309, %310 : vector<16x16xf32>
    %c1_214 = arith.constant 1 : index
    %c0_215 = arith.constant 0 : index
    %c1_216 = arith.constant 1 : index
    %c1_217 = arith.constant 1 : index
    %312 = vector.load %arg3[%c1_214, %c0_215, %c1_216, %c1_217] : memref<2x3x18x18xf32, #tpu.memory_space<vmem>>, vector<1x1x16x16xf32>
    %313 = vector.shape_cast %312 : vector<1x1x16x16xf32> to vector<16x16xf32>
    %314 = vector.shape_cast %311 : vector<16x16xf32> to vector<1x1x16x16xf32>
    tpu.vector_store %arg3[%c1_214, %c0_215, %c1_216, %c1_217], %314 {strides = array<i32>} : memref<2x3x18x18xf32, #tpu.memory_space<vmem>>, vector<1x1x16x16xf32>,
    %c1_218 = arith.constant 1 : index
    %c6_219 = arith.constant 6 : index
    %315 = memref.load %arg2[%c1_218, %c6_219] : memref<3x7xf32, #tpu.memory_space<smem>>
    %c1_220 = arith.constant 1 : index
    %c4_221 = arith.constant 4 : index
    %316 = memref.load %arg2[%c1_220, %c4_221] : memref<3x7xf32, #tpu.memory_space<smem>>
    %c1_222 = arith.constant 1 : index
    %c5_223 = arith.constant 5 : index
    %317 = memref.load %arg2[%c1_222, %c5_223] : memref<3x7xf32, #tpu.memory_space<smem>>
    %cst_224 = arith.constant 1.360000e+02 : f32
    %318 = arith.mulf %cst_224, %315 : f32
    %319 = vector.broadcast %318 : f32 to vector<1x1xf32>
    %320 = arith.addf %153, %319 : vector<1x1xf32>
    %cst_225 = arith.constant 0.00154320989 : f32
    %321 = vector.broadcast %cst_225 : f32 to vector<1x1xf32>
    %322 = arith.mulf %320, %321 : vector<1x1xf32>
    %cst_226 = arith.constant 0.000000e+00 : f32
    %323 = vector.broadcast %cst_226 : f32 to vector<1x1xf32>
    %c0_227 = arith.constant 0 : index
    %c1_228 = arith.constant 1 : index
    %c0_229 = arith.constant 0 : index
    %c0_230 = arith.constant 0 : index
    %324 = vector.load %arg4[%c0_227, %c1_228, %c0_229, %c0_230] : memref<2x3x16x16xf32, #tpu.memory_space<vmem>>, vector<1x1x16x16xf32>
    %325 = vector.shape_cast %324 : vector<1x1x16x16xf32> to vector<16x16xf32>
    %326 = vector.broadcast %322 : vector<1x1xf32> to vector<16x16xf32>
    %327 = arith.subf %325, %326 : vector<16x16xf32>
    %328 = arith.mulf %327, %327 : vector<16x16xf32>
    %329 = vector.shape_cast %328 : vector<16x16xf32> to vector<1x16x16xf32>
    %cst_231 = arith.constant dense<0.000000e+00> : vector<1xf32>
    %330 = vector.multi_reduction <add>, %329, %cst_231 [1, 2] : vector<1x16x16xf32> to vector<1xf32>
    %331 = vector.shape_cast %330 : vector<1xf32> to vector<1x1x1xf32>
    %332 = vector.extract %331[0, 0, 0] : f32 from vector<1x1x1xf32>
    %333 = vector.broadcast %332 : f32 to vector<1x1xf32>
    %334 = arith.addf %323, %333 : vector<1x1xf32>
    %c1_232 = arith.constant 1 : index
    %c1_233 = arith.constant 1 : index
    %c0_234 = arith.constant 0 : index
    %c0_235 = arith.constant 0 : index
    %335 = vector.load %arg4[%c1_232, %c1_233, %c0_234, %c0_235] : memref<2x3x16x16xf32, #tpu.memory_space<vmem>>, vector<1x1x16x16xf32>
    %336 = vector.shape_cast %335 : vector<1x1x16x16xf32> to vector<16x16xf32>
    %337 = vector.broadcast %322 : vector<1x1xf32> to vector<16x16xf32>
    %338 = arith.subf %336, %337 : vector<16x16xf32>
    %339 = arith.mulf %338, %338 : vector<16x16xf32>
    %340 = vector.shape_cast %339 : vector<16x16xf32> to vector<1x16x16xf32>
    %cst_236 = arith.constant dense<0.000000e+00> : vector<1xf32>
    %341 = vector.multi_reduction <add>, %340, %cst_236 [1, 2] : vector<1x16x16xf32> to vector<1xf32>
    %342 = vector.shape_cast %341 : vector<1xf32> to vector<1x1x1xf32>
    %343 = vector.extract %342[0, 0, 0] : f32 from vector<1x1x1xf32>
    %344 = vector.broadcast %343 : f32 to vector<1x1xf32>
    %345 = arith.addf %334, %344 : vector<1x1xf32>
    %346 = vector.broadcast %315 : f32 to vector<1x1xf32>
    %347 = arith.subf %346, %322 : vector<1x1xf32>
    %cst_237 = arith.constant 1.360000e+02 : f32
    %348 = vector.broadcast %cst_237 : f32 to vector<1x1xf32>
    %349 = arith.mulf %348, %347 : vector<1x1xf32>
    %350 = vector.broadcast %315 : f32 to vector<1x1xf32>
    %351 = arith.subf %350, %322 : vector<1x1xf32>
    %352 = arith.mulf %349, %351 : vector<1x1xf32>
    %353 = arith.addf %345, %352 : vector<1x1xf32>
    %cst_238 = arith.constant 0.00154320989 : f32
    %354 = vector.broadcast %cst_238 : f32 to vector<1x1xf32>
    %355 = arith.mulf %353, %354 : vector<1x1xf32>
    %cst_239 = arith.constant 9.99999974E-6 : f32
    %356 = vector.broadcast %cst_239 : f32 to vector<1x1xf32>
    %357 = arith.addf %355, %356 : vector<1x1xf32>
    %358 = math.rsqrt %357 : vector<1x1xf32>
    %359 = vector.broadcast %316 : f32 to vector<1x1xf32>
    %360 = arith.mulf %359, %358 : vector<1x1xf32>
    %361 = arith.mulf %322, %360 : vector<1x1xf32>
    %362 = vector.broadcast %317 : f32 to vector<1x1xf32>
    %363 = arith.subf %362, %361 : vector<1x1xf32>
    %364 = vector.broadcast %315 : f32 to vector<1x1xf32>
    %365 = arith.mulf %364, %360 : vector<1x1xf32>
    %366 = arith.addf %365, %363 : vector<1x1xf32>
    %cst_240 = arith.constant 0.000000e+00 : f32
    %367 = vector.broadcast %cst_240 : f32 to vector<1x1xf32>
    %368 = arith.maximumf %366, %367 : vector<1x1xf32>
    %369 = vector.shape_cast %368 : vector<1x1xf32> to vector<1x1xf32>
    %370 = vector.broadcast %369 : vector<1x1xf32> to vector<18x18xf32>
    %c0_241 = arith.constant 0 : index
    %c1_242 = arith.constant 1 : index
    %c0_243 = arith.constant 0 : index
    %c0_244 = arith.constant 0 : index
    %371 = vector.load %arg3[%c0_241, %c1_242, %c0_243, %c0_244] : memref<2x3x18x18xf32, #tpu.memory_space<vmem>>, vector<1x1x18x18xf32>
    %372 = vector.shape_cast %371 : vector<1x1x18x18xf32> to vector<18x18xf32>
    %373 = vector.shape_cast %370 : vector<18x18xf32> to vector<1x1x18x18xf32>
    tpu.vector_store %arg3[%c0_241, %c1_242, %c0_243, %c0_244], %373 {strides = array<i32>} : memref<2x3x18x18xf32, #tpu.memory_space<vmem>>, vector<1x1x18x18xf32>,
    %c0_245 = arith.constant 0 : index
    %c1_246 = arith.constant 1 : index
    %c0_247 = arith.constant 0 : index
    %c0_248 = arith.constant 0 : index
    %374 = vector.load %arg4[%c0_245, %c1_246, %c0_247, %c0_248] : memref<2x3x16x16xf32, #tpu.memory_space<vmem>>, vector<1x1x16x16xf32>
    %375 = vector.shape_cast %374 : vector<1x1x16x16xf32> to vector<16x16xf32>
    %376 = vector.broadcast %360 : vector<1x1xf32> to vector<16x16xf32>
    %377 = arith.mulf %375, %376 : vector<16x16xf32>
    %378 = vector.broadcast %363 : vector<1x1xf32> to vector<16x16xf32>
    %379 = arith.addf %377, %378 : vector<16x16xf32>
    %cst_249 = arith.constant 0.000000e+00 : f32
    %380 = vector.broadcast %cst_249 : f32 to vector<16x16xf32>
    %381 = arith.maximumf %379, %380 : vector<16x16xf32>
    %c0_250 = arith.constant 0 : index
    %c1_251 = arith.constant 1 : index
    %c1_252 = arith.constant 1 : index
    %c1_253 = arith.constant 1 : index
    %382 = vector.load %arg3[%c0_250, %c1_251, %c1_252, %c1_253] : memref<2x3x18x18xf32, #tpu.memory_space<vmem>>, vector<1x1x16x16xf32>
    %383 = vector.shape_cast %382 : vector<1x1x16x16xf32> to vector<16x16xf32>
    %384 = vector.shape_cast %381 : vector<16x16xf32> to vector<1x1x16x16xf32>
    tpu.vector_store %arg3[%c0_250, %c1_251, %c1_252, %c1_253], %384 {strides = array<i32>} : memref<2x3x18x18xf32, #tpu.memory_space<vmem>>, vector<1x1x16x16xf32>,
    %c1_254 = arith.constant 1 : index
    %c1_255 = arith.constant 1 : index
    %c0_256 = arith.constant 0 : index
    %c0_257 = arith.constant 0 : index
    %385 = vector.load %arg3[%c1_254, %c1_255, %c0_256, %c0_257] : memref<2x3x18x18xf32, #tpu.memory_space<vmem>>, vector<1x1x18x18xf32>
    %386 = vector.shape_cast %385 : vector<1x1x18x18xf32> to vector<18x18xf32>
    %387 = vector.shape_cast %370 : vector<18x18xf32> to vector<1x1x18x18xf32>
    tpu.vector_store %arg3[%c1_254, %c1_255, %c0_256, %c0_257], %387 {strides = array<i32>} : memref<2x3x18x18xf32, #tpu.memory_space<vmem>>, vector<1x1x18x18xf32>,
    %c1_258 = arith.constant 1 : index
    %c1_259 = arith.constant 1 : index
    %c0_260 = arith.constant 0 : index
    %c0_261 = arith.constant 0 : index
    %388 = vector.load %arg4[%c1_258, %c1_259, %c0_260, %c0_261] : memref<2x3x16x16xf32, #tpu.memory_space<vmem>>, vector<1x1x16x16xf32>
    %389 = vector.shape_cast %388 : vector<1x1x16x16xf32> to vector<16x16xf32>
    %390 = vector.broadcast %360 : vector<1x1xf32> to vector<16x16xf32>
    %391 = arith.mulf %389, %390 : vector<16x16xf32>
    %392 = vector.broadcast %363 : vector<1x1xf32> to vector<16x16xf32>
    %393 = arith.addf %391, %392 : vector<16x16xf32>
    %cst_262 = arith.constant 0.000000e+00 : f32
    %394 = vector.broadcast %cst_262 : f32 to vector<16x16xf32>
    %395 = arith.maximumf %393, %394 : vector<16x16xf32>
    %c1_263 = arith.constant 1 : index
    %c1_264 = arith.constant 1 : index
    %c1_265 = arith.constant 1 : index
    %c1_266 = arith.constant 1 : index
    %396 = vector.load %arg3[%c1_263, %c1_264, %c1_265, %c1_266] : memref<2x3x18x18xf32, #tpu.memory_space<vmem>>, vector<1x1x16x16xf32>
    %397 = vector.shape_cast %396 : vector<1x1x16x16xf32> to vector<16x16xf32>
    %398 = vector.shape_cast %395 : vector<16x16xf32> to vector<1x1x16x16xf32>
    tpu.vector_store %arg3[%c1_263, %c1_264, %c1_265, %c1_266], %398 {strides = array<i32>} : memref<2x3x18x18xf32, #tpu.memory_space<vmem>>, vector<1x1x16x16xf32>,
    %c2_267 = arith.constant 2 : index
    %c6_268 = arith.constant 6 : index
    %399 = memref.load %arg2[%c2_267, %c6_268] : memref<3x7xf32, #tpu.memory_space<smem>>
    %c2_269 = arith.constant 2 : index
    %c4_270 = arith.constant 4 : index
    %400 = memref.load %arg2[%c2_269, %c4_270] : memref<3x7xf32, #tpu.memory_space<smem>>
    %c2_271 = arith.constant 2 : index
    %c5_272 = arith.constant 5 : index
    %401 = memref.load %arg2[%c2_271, %c5_272] : memref<3x7xf32, #tpu.memory_space<smem>>
    %cst_273 = arith.constant 1.360000e+02 : f32
    %402 = arith.mulf %cst_273, %399 : f32
    %403 = vector.broadcast %402 : f32 to vector<1x1xf32>
    %404 = arith.addf %230, %403 : vector<1x1xf32>
    %cst_274 = arith.constant 0.00154320989 : f32
    %405 = vector.broadcast %cst_274 : f32 to vector<1x1xf32>
    %406 = arith.mulf %404, %405 : vector<1x1xf32>
    %cst_275 = arith.constant 0.000000e+00 : f32
    %407 = vector.broadcast %cst_275 : f32 to vector<1x1xf32>
    %c0_276 = arith.constant 0 : index
    %c2_277 = arith.constant 2 : index
    %c0_278 = arith.constant 0 : index
    %c0_279 = arith.constant 0 : index
    %408 = vector.load %arg4[%c0_276, %c2_277, %c0_278, %c0_279] : memref<2x3x16x16xf32, #tpu.memory_space<vmem>>, vector<1x1x16x16xf32>
    %409 = vector.shape_cast %408 : vector<1x1x16x16xf32> to vector<16x16xf32>
    %410 = vector.broadcast %406 : vector<1x1xf32> to vector<16x16xf32>
    %411 = arith.subf %409, %410 : vector<16x16xf32>
    %412 = arith.mulf %411, %411 : vector<16x16xf32>
    %413 = vector.shape_cast %412 : vector<16x16xf32> to vector<1x16x16xf32>
    %cst_280 = arith.constant dense<0.000000e+00> : vector<1xf32>
    %414 = vector.multi_reduction <add>, %413, %cst_280 [1, 2] : vector<1x16x16xf32> to vector<1xf32>
    %415 = vector.shape_cast %414 : vector<1xf32> to vector<1x1x1xf32>
    %416 = vector.extract %415[0, 0, 0] : f32 from vector<1x1x1xf32>
    %417 = vector.broadcast %416 : f32 to vector<1x1xf32>
    %418 = arith.addf %407, %417 : vector<1x1xf32>
    %c1_281 = arith.constant 1 : index
    %c2_282 = arith.constant 2 : index
    %c0_283 = arith.constant 0 : index
    %c0_284 = arith.constant 0 : index
    %419 = vector.load %arg4[%c1_281, %c2_282, %c0_283, %c0_284] : memref<2x3x16x16xf32, #tpu.memory_space<vmem>>, vector<1x1x16x16xf32>
    %420 = vector.shape_cast %419 : vector<1x1x16x16xf32> to vector<16x16xf32>
    %421 = vector.broadcast %406 : vector<1x1xf32> to vector<16x16xf32>
    %422 = arith.subf %420, %421 : vector<16x16xf32>
    %423 = arith.mulf %422, %422 : vector<16x16xf32>
    %424 = vector.shape_cast %423 : vector<16x16xf32> to vector<1x16x16xf32>
    %cst_285 = arith.constant dense<0.000000e+00> : vector<1xf32>
    %425 = vector.multi_reduction <add>, %424, %cst_285 [1, 2] : vector<1x16x16xf32> to vector<1xf32>
    %426 = vector.shape_cast %425 : vector<1xf32> to vector<1x1x1xf32>
    %427 = vector.extract %426[0, 0, 0] : f32 from vector<1x1x1xf32>
    %428 = vector.broadcast %427 : f32 to vector<1x1xf32>
    %429 = arith.addf %418, %428 : vector<1x1xf32>
    %430 = vector.broadcast %399 : f32 to vector<1x1xf32>
    %431 = arith.subf %430, %406 : vector<1x1xf32>
    %cst_286 = arith.constant 1.360000e+02 : f32
    %432 = vector.broadcast %cst_286 : f32 to vector<1x1xf32>
    %433 = arith.mulf %432, %431 : vector<1x1xf32>
    %434 = vector.broadcast %399 : f32 to vector<1x1xf32>
    %435 = arith.subf %434, %406 : vector<1x1xf32>
    %436 = arith.mulf %433, %435 : vector<1x1xf32>
    %437 = arith.addf %429, %436 : vector<1x1xf32>
    %cst_287 = arith.constant 0.00154320989 : f32
    %438 = vector.broadcast %cst_287 : f32 to vector<1x1xf32>
    %439 = arith.mulf %437, %438 : vector<1x1xf32>
    %cst_288 = arith.constant 9.99999974E-6 : f32
    %440 = vector.broadcast %cst_288 : f32 to vector<1x1xf32>
    %441 = arith.addf %439, %440 : vector<1x1xf32>
    %442 = math.rsqrt %441 : vector<1x1xf32>
    %443 = vector.broadcast %400 : f32 to vector<1x1xf32>
    %444 = arith.mulf %443, %442 : vector<1x1xf32>
    %445 = arith.mulf %406, %444 : vector<1x1xf32>
    %446 = vector.broadcast %401 : f32 to vector<1x1xf32>
    %447 = arith.subf %446, %445 : vector<1x1xf32>
    %448 = vector.broadcast %399 : f32 to vector<1x1xf32>
    %449 = arith.mulf %448, %444 : vector<1x1xf32>
    %450 = arith.addf %449, %447 : vector<1x1xf32>
    %cst_289 = arith.constant 0.000000e+00 : f32
    %451 = vector.broadcast %cst_289 : f32 to vector<1x1xf32>
    %452 = arith.maximumf %450, %451 : vector<1x1xf32>
    %453 = vector.shape_cast %452 : vector<1x1xf32> to vector<1x1xf32>
    %454 = vector.broadcast %453 : vector<1x1xf32> to vector<18x18xf32>
    %c0_290 = arith.constant 0 : index
    %c2_291 = arith.constant 2 : index
    %c0_292 = arith.constant 0 : index
    %c0_293 = arith.constant 0 : index
    %455 = vector.load %arg3[%c0_290, %c2_291, %c0_292, %c0_293] : memref<2x3x18x18xf32, #tpu.memory_space<vmem>>, vector<1x1x18x18xf32>
    %456 = vector.shape_cast %455 : vector<1x1x18x18xf32> to vector<18x18xf32>
    %457 = vector.shape_cast %454 : vector<18x18xf32> to vector<1x1x18x18xf32>
    tpu.vector_store %arg3[%c0_290, %c2_291, %c0_292, %c0_293], %457 {strides = array<i32>} : memref<2x3x18x18xf32, #tpu.memory_space<vmem>>, vector<1x1x18x18xf32>,
    %c0_294 = arith.constant 0 : index
    %c2_295 = arith.constant 2 : index
    %c0_296 = arith.constant 0 : index
    %c0_297 = arith.constant 0 : index
    %458 = vector.load %arg4[%c0_294, %c2_295, %c0_296, %c0_297] : memref<2x3x16x16xf32, #tpu.memory_space<vmem>>, vector<1x1x16x16xf32>
    %459 = vector.shape_cast %458 : vector<1x1x16x16xf32> to vector<16x16xf32>
    %460 = vector.broadcast %444 : vector<1x1xf32> to vector<16x16xf32>
    %461 = arith.mulf %459, %460 : vector<16x16xf32>
    %462 = vector.broadcast %447 : vector<1x1xf32> to vector<16x16xf32>
    %463 = arith.addf %461, %462 : vector<16x16xf32>
    %cst_298 = arith.constant 0.000000e+00 : f32
    %464 = vector.broadcast %cst_298 : f32 to vector<16x16xf32>
    %465 = arith.maximumf %463, %464 : vector<16x16xf32>
    %c0_299 = arith.constant 0 : index
    %c2_300 = arith.constant 2 : index
    %c1_301 = arith.constant 1 : index
    %c1_302 = arith.constant 1 : index
    %466 = vector.load %arg3[%c0_299, %c2_300, %c1_301, %c1_302] : memref<2x3x18x18xf32, #tpu.memory_space<vmem>>, vector<1x1x16x16xf32>
    %467 = vector.shape_cast %466 : vector<1x1x16x16xf32> to vector<16x16xf32>
    %468 = vector.shape_cast %465 : vector<16x16xf32> to vector<1x1x16x16xf32>
    tpu.vector_store %arg3[%c0_299, %c2_300, %c1_301, %c1_302], %468 {strides = array<i32>} : memref<2x3x18x18xf32, #tpu.memory_space<vmem>>, vector<1x1x16x16xf32>,
    %c1_303 = arith.constant 1 : index
    %c2_304 = arith.constant 2 : index
    %c0_305 = arith.constant 0 : index
    %c0_306 = arith.constant 0 : index
    %469 = vector.load %arg3[%c1_303, %c2_304, %c0_305, %c0_306] : memref<2x3x18x18xf32, #tpu.memory_space<vmem>>, vector<1x1x18x18xf32>
    %470 = vector.shape_cast %469 : vector<1x1x18x18xf32> to vector<18x18xf32>
    %471 = vector.shape_cast %454 : vector<18x18xf32> to vector<1x1x18x18xf32>
    tpu.vector_store %arg3[%c1_303, %c2_304, %c0_305, %c0_306], %471 {strides = array<i32>} : memref<2x3x18x18xf32, #tpu.memory_space<vmem>>, vector<1x1x18x18xf32>,
    %c1_307 = arith.constant 1 : index
    %c2_308 = arith.constant 2 : index
    %c0_309 = arith.constant 0 : index
    %c0_310 = arith.constant 0 : index
    %472 = vector.load %arg4[%c1_307, %c2_308, %c0_309, %c0_310] : memref<2x3x16x16xf32, #tpu.memory_space<vmem>>, vector<1x1x16x16xf32>
    %473 = vector.shape_cast %472 : vector<1x1x16x16xf32> to vector<16x16xf32>
    %474 = vector.broadcast %444 : vector<1x1xf32> to vector<16x16xf32>
    %475 = arith.mulf %473, %474 : vector<16x16xf32>
    %476 = vector.broadcast %447 : vector<1x1xf32> to vector<16x16xf32>
    %477 = arith.addf %475, %476 : vector<16x16xf32>
    %cst_311 = arith.constant 0.000000e+00 : f32
    %478 = vector.broadcast %cst_311 : f32 to vector<16x16xf32>
    %479 = arith.maximumf %477, %478 : vector<16x16xf32>
    %c1_312 = arith.constant 1 : index
    %c2_313 = arith.constant 2 : index
    %c1_314 = arith.constant 1 : index
    %c1_315 = arith.constant 1 : index
    %480 = vector.load %arg3[%c1_312, %c2_313, %c1_314, %c1_315] : memref<2x3x18x18xf32, #tpu.memory_space<vmem>>, vector<1x1x16x16xf32>
    %481 = vector.shape_cast %480 : vector<1x1x16x16xf32> to vector<16x16xf32>
    %482 = vector.shape_cast %479 : vector<16x16xf32> to vector<1x1x16x16xf32>
    tpu.vector_store %arg3[%c1_312, %c2_313, %c1_314, %c1_315], %482 {strides = array<i32>} : memref<2x3x18x18xf32, #tpu.memory_space<vmem>>, vector<1x1x16x16xf32>,
    return
  }
  func.func @transform_0(%arg0: i32) -> (i32, i32, i32, i32) {
    %c0_i32 = arith.constant 0 : i32
    %c0_i32_0 = arith.constant 0 : i32
    %c0_i32_1 = arith.constant 0 : i32
    %c0_i32_2 = arith.constant 0 : i32
    %c0_i32_3 = arith.constant 0 : i32
    return %c0_i32, %c0_i32_0, %c0_i32_1, %c0_i32_2 : i32, i32, i32, i32
  }
  func.func @transform_1(%arg0: i32) -> (i32, i32) {
    %c0_i32 = arith.constant 0 : i32
    %c0_i32_0 = arith.constant 0 : i32
    %c0_i32_1 = arith.constant 0 : i32
    return %c0_i32, %c0_i32_0 : i32, i32
  }
  func.func @transform_2(%arg0: i32) -> (i32, i32, i32, i32) {
    %c0_i32 = arith.constant 0 : i32
    %c0_i32_0 = arith.constant 0 : i32
    %c0_i32_1 = arith.constant 0 : i32
    %c0_i32_2 = arith.constant 0 : i32
    %c0_i32_3 = arith.constant 0 : i32
    return %c0_i32, %c0_i32_0, %c0_i32_1, %c0_i32_2 : i32, i32, i32, i32
  }
}

</mosaic_0001>

<bundles_post_ra>
// kernel: model_forward.1
= control target key start
LH: loop header
LB: loop body
LE: loop exit
PB: predicated region body
PF: predicated region fallthrough
CT: control target
= control target key end

     0   :  { %7 = vsyncpa [#allocation4], 0  ;;  %s1261_s0 = inlined_call_operand.hbm [shape: f32[2,3,16,16], index: 0, kind: input, shape index: {}]   ;;  %s1262_s1 = inlined_call_operand.vmem [shape: f32[3,7], index: 1, kind: input, shape index: {}]   ;;  %s1263_s2 = inlined_call_operand.vmem [shape: f32[2,3,18,18], index: 2, kind: output, shape index: {}]  }
   0x1   :  { %s13_s11 = sshll.u32 %s1261_s0, 4  ;;  %s14_s11 = int_to_ptr.hbm [resolvable:$true] %s13_s11 }
   0x2   :  { %8 = vsyncpa [#allocation5], 0  ;;  %s850_s12 = smov [#allocation3]   ;;  %s27_s16 = sshll.u32 %s1262_s1, 4  ;;  %s28_s16 = int_to_ptr.vmem [resolvable:$true] %s27_s16 }
   0x3   :  { %s15_s13 = sshll.u32 %s850_s12, 4  ;;  %s851_s17 = smov 128   ;;  %s16_s13 = int_to_ptr.vmem [resolvable:$true] %s15_s13 }
   0x4   :  { %s852_s18 = smov 8   ;;  %s853_s19 = smov [#allocation6]  }
   0x5   :  { %21 = dma.hbm_to_vmem [thread:$0]  %s14_s11, 1536, %s16_s13, [#allocation4], %s851_s17, %s851_s17, %s852_s18  }
   0x6   :  { %30 = dma.vmem_to_smem %s28_s16, 64, %s853_s19, [#allocation5]  }
   0x7   :  { %846 = dma.done.wait [#allocation4], 1536  }
   0x8   :  { %847 = vsyncadd [#allocation4], 4294965760 }
   0x9   :  { %848 = dma.done.wait [#allocation5], 64  }
   0xa   :  { %849 = vsyncadd [#allocation5], 4294967232 }
   0xb   :  { %39 = sfence }
   0xc   :  { %s733_s0 = sld [smem:[#allocation6 + $0x100]]  ;;  %v258_v0 = vld [vmem:[#allocation3] sm:$0xff]  ;;  %v259_v1 = vld [vmem:[#allocation3 + $0x8] sm:$0xff]  ;;  %v876_v2 = vld [vmem:[#allocation3 + $0x30] sm:$0xff]  ;;  %vm78_vm0 = vcmask 130048   ;;  %vm435_vm10 = vcmask 146432  }
   0xd   :  { %s734_s20 = sld [smem:[#allocation6 + $0x101]]  ;;  %v264_v3 = vld [vmem:[#allocation3 + $0x10] sm:$0xff]  ;;  %v265_v4 = vld [vmem:[#allocation3 + $0x18] sm:$0xff]  ;;  %v882_v7 = vld [vmem:[#allocation3 + $0x20] sm:$0xff]  ;;  %vm438_vm11 = vcmask 140288   ;;  %vm456_vm12 = vcmask 138248  }
   0xe   :  { %s735_s21 = sld [smem:[#allocation6 + $0x102]]  ;;  %v880_v5 = vld [vmem:[#allocation3 + $0x38] sm:$0xff]  ;;  %v884_v8 = vld [vmem:[#allocation3 + $0x28] sm:$0xff]  ;;  %v888_v9 = vld [vmem:[#allocation3 + $0x40] sm:$0xff] }
   0xf   :  { %s736_s22 = sld [smem:[#allocation6 + $0x103]]  ;;  %v891_v14 = vld [vmem:[#allocation3 + $0x48] sm:$0xff]  ;;  %v906_v27 = vld [vmem:[#allocation3 + $0x50] sm:$0xff]  ;;  %v944_v60 = vld [vmem:[#allocation3 + $0x58] sm:$0xff] }
  0x10   :  { %s725_s23 = sld [smem:[#allocation6 + $0x80]] }
  0x11   :  { %s878_s1 = sld [smem:[#allocation6 + $0x81]] }
  0x12   :  { %v260_v6 = vstv %s733_s0  ;;  %s886_s24 = sld [smem:[#allocation6 + $0x82]] }
  0x13   :  { %v261_v10 = vmul.f32 %v260_v6, %v258_v0  ;;  %v262_v11 = vmul.f32 %v260_v6, %v259_v1  ;;  %v266_v12 = vstv %s734_s20  ;;  %s728_s25 = sld [smem:[#allocation6 + $0x83]]  ;;  %v314_v13 = vmul.f32 %v876_v2, %v260_v6 }
  0x14   :  { %v267_v15 = vmul.f32 %v266_v12, %v264_v3  ;;  %v268_v16 = vmul.f32 %v266_v12, %v265_v4  ;;  %v274_v17 = vstv %s735_s21  ;;  %s893_s26 = sld [smem:[#allocation6]]  ;;  %v315_v18 = vmul.f32 %v880_v5, %v260_v6 }
  0x15   :  { %v275_v19 = vmul.f32 %v274_v17, %v882_v7  ;;  %v276_v20 = vmul.f32 %v274_v17, %v884_v8  ;;  %v898_v21 = vstv %s736_s22  ;;  %s719_s27 = sld [smem:[#allocation6 + $0x1]]  ;;  %v320_v22 = vmul.f32 %v888_v9, %v266_v12 }
  0x16   :  { %v269_v23 = vadd.f32 %v267_v15, %v261_v10  ;;  %v270_v24 = vadd.f32 %v268_v16, %v262_v11  ;;  %v901_v25 = vstv %s725_s23  ;;  %s903_s28 = sld [smem:[#allocation6 + $0x2]]  ;;  %v321_v26 = vmul.f32 %v891_v14, %v266_v12 }
  0x17   :  { %v155_v28 = vmul.f32 %v258_v0, %v901_v25  ;;  %v156_v29 = vmul.f32 %v259_v1, %v901_v25  ;;  %v911_v30 = vstv %s878_s1  ;;  %s913_s29 = sld [smem:[#allocation6 + $0x3]]  ;;  %v322_v31 = vadd.f32 %v320_v22, %v314_v13 }
  0x18   :  { %v277_v32 = vadd.f32 %v275_v19, %v269_v23  ;;  %v278_v33 = vadd.f32 %v276_v20, %v270_v24  ;;  %v161_v34 = vmul.f32 %v264_v3, %v911_v30  ;;  %v162_v35 = vmul.f32 %v265_v4, %v911_v30  ;;  %s1009_s30 = sld [smem:[#allocation6 + $0x6]] }
  0x19   :  { %v918_v36 = vstv %s886_s24  ;;  %v920_v37 = vstv %s728_s25  ;;  %v323_v38 = vadd.f32 %v321_v26, %v315_v18  ;;  %v328_v39 = vmul.f32 %v906_v27, %v274_v17  ;;  %s1011_s3 = sld [smem:[#allocation6 + $0x86]]  ;;  %s854_s24 = smov 1  }
  0x1a   :  { %v281_v40 = vadd.f32 %v898_v21, %v277_v32  ;;  %v282_v41 = vadd.f32 %v898_v21, %v278_v33  ;;  %v163_v42 = vadd.f32 %v161_v34, %v155_v28  ;;  %v164_v43 = vadd.f32 %v162_v35, %v156_v29  ;;  %s1013_s4 = sld [smem:[#allocation6 + $0x106]] }
  0x1b   :  { %v169_v44 = vmul.f32 %v882_v7, %v918_v36  ;;  %v170_v45 = vmul.f32 %v884_v8, %v918_v36  ;;  %v930_v46 = vstv %s893_s26  ;;  %v932_v47 = vstv %s719_s27  ;;  %s742_s0 = sld [smem:[#allocation6 + $0x4]] }
  0x1c   :  { %v283_v48 = vadd.f32 3.0, %v281_v40  ;;  %v284_v49 = vadd.f32 3.0, %v282_v41  ;;  %v44_v50 = vmul.f32 %v258_v0, %v930_v46  ;;  %v45_v51 = vmul.f32 %v259_v1, %v930_v46  ;;  %s743_s20 = sld [smem:[#allocation6 + $0x5]] }
  0x1d   :  { %v171_v52 = vadd.f32 %v169_v44, %v163_v42  ;;  %v172_v53 = vadd.f32 %v170_v45, %v164_v43  ;;  %v51_v54 = vmul.f32 %v264_v3, %v932_v47  ;;  %v52_v55 = vmul.f32 %v265_v4, %v932_v47  ;;  %s1096_s21 = sld [smem:[#allocation6 + $0x84]] }
  0x1e   :  { %v285_v56 = vmax.f32 %v283_v48, 0.0  ;;  %v286_v57 = vmax.f32 %v284_v49, 0.0  ;;  %v939_v58 = vstv %s903_s28  ;;  %v942_v59 = vstv %s913_s29  ;;  %s366_s5 = smul.f32 136.0, %s1009_s30  ;;  %s1098_s22 = sld [smem:[#allocation6 + $0x85]] }
  0x1f   :  { %v175_v61 = vadd.f32 %v920_v37, %v171_v52  ;;  %v176_v62 = vadd.f32 %v920_v37, %v172_v53  ;;  %v53_v63 = vadd.f32 %v51_v54, %v44_v50  ;;  %v54_v0 = vadd.f32 %v52_v55, %v45_v51  ;;  %s484_s7 = smul.f32 136.0, %s1011_s3  ;;  %s1100_s23 = sld [smem:[#allocation6 + $0x104]] }
  0x20   :  { %v287_v1 = vmin.f32 %v285_v56, 6.0  ;;  %v288_v6 = vmin.f32 %v286_v57, 6.0  ;;  %v60_v3 = vmul.f32 %v882_v7, %v939_v58  ;;  %v61_v4 = vmul.f32 %v884_v8, %v939_v58  ;;  %s600_s10 = smul.f32 136.0, %s1013_s4  ;;  %s1107_s1 = sld [smem:[#allocation6 + $0x105]] }
  0x21   :  { %v177_v10 = vadd.f32 3.0, %v175_v61  ;;  %v178_v11 = vadd.f32 3.0, %v176_v62  ;;  %v329_v12 = vmul.f32 %v944_v60, %v274_v17  ;;  %v330_v13 = vadd.f32 %v328_v39, %v322_v31 }
  0x22   :  { %v289_v15 = vmul.f32 %v287_v1, %v281_v40  ;;  %v290_v16 = vmul.f32 %v288_v6, %v282_v41  ;;  %v62_v18 = vadd.f32 %v60_v3, %v53_v63  ;;  %v63_v19 = vadd.f32 %v61_v4, %v54_v0 }
  0x23   :  { %v179_v20 = vmax.f32 %v177_v10, 0.0  ;;  %v180_v22 = vmax.f32 %v178_v11, 0.0  ;;  %v331_v23 = vadd.f32 %v329_v12, %v323_v38  ;;  %v334_v24 = vadd.f32 %v330_v13, %v898_v21 }
  0x24   :  { %v291_v26 = vmul.f32 0.16666667, %v289_v15  ;;  %v292_v28 = vmul.f32 0.16666667, %v290_v16  ;;  %v66_v7 = vadd.f32 %v942_v59, %v62_v18  ;;  %v67_v8 = vadd.f32 %v942_v59, %v63_v19 }
  0x25   :  { %v181_v29 = vmin.f32 %v179_v20, 6.0  ;;  %v182_v32 = vmin.f32 %v180_v22, 6.0  ;;  %v335_v17 = vadd.f32 %v331_v23, %v898_v21  ;;  %v336_v31 = vadd.f32 3.0, %v334_v24 }
  0x26   :  { %v296_v33 = vsel %vm78_vm0, %v291_v26, 0.0  ;;  %v297_v34 = vsel %vm78_vm0, %v292_v28, 0.0  ;;  %294 = vst.msk [vmem:[#allocation2 + $0x20] sm:$0xff] %vm78_vm0, %v291_v26  ;;  %v68_v35 = vadd.f32 3.0, %v66_v7  ;;  %v69_v38 = vadd.f32 3.0, %v67_v8 }
  0x27   :  { %v298_v39 = vadd.f32 %v297_v34, %v296_v33  ;;  %295 = vst.msk [vmem:[#allocation2 + $0x28] sm:$0xff] %vm78_vm0, %v292_v28  ;;  %v183_v40 = vmul.f32 %v181_v29, %v175_v61  ;;  %v184_v41 = vmul.f32 %v182_v32, %v176_v62  ;;  %v337_v42 = vadd.f32 3.0, %v335_v17 }
  0x28   :  { %v70_v43 = vmax.f32 %v68_v35, 0.0  ;;  %v71_v44 = vmax.f32 %v69_v38, 0.0  ;;  %v338_v45 = vmax.f32 %v336_v31, 0.0  ;;  %v208_v21 = vmul.f32 %v876_v2, %v901_v25 }
  0x29   :  { %299 = vadd.xlane.f32.xlu2 %v298_v39  ;;  %v185_v48 = vmul.f32 0.16666667, %v183_v40  ;;  %v186_v49 = vmul.f32 0.16666667, %v184_v41  ;;  %v339_v50 = vmax.f32 %v337_v42, 0.0  ;;  %v209_v51 = vmul.f32 %v880_v5, %v901_v25 }
  0x2a   :  { %v72_v52 = vmin.f32 %v70_v43, 6.0  ;;  %v73_v53 = vmin.f32 %v71_v44, 6.0  ;;  %v340_v54 = vmin.f32 %v338_v45, 6.0  ;;  %v214_v55 = vmul.f32 %v888_v9, %v911_v30 }
  0x2b   :  { %v190_v56 = vsel %vm78_vm0, %v185_v48, 0.0  ;;  %v191_v57 = vsel %vm78_vm0, %v186_v49, 0.0  ;;  %188 = vst.msk [vmem:[#allocation2 + $0x10] sm:$0xff] %vm78_vm0, %v185_v48  ;;  %v341_v61 = vmin.f32 %v339_v50, 6.0  ;;  %v215_v62 = vmul.f32 %v891_v14, %v911_v30 }
  0x2c   :  { %v192_v63 = vadd.f32 %v191_v57, %v190_v56  ;;  %189 = vst.msk [vmem:[#allocation2 + $0x18] sm:$0xff] %vm78_vm0, %v186_v49  ;;  %v74_v25 = vmul.f32 %v72_v52, %v66_v7  ;;  %v75_v0 = vmul.f32 %v73_v53, %v67_v8  ;;  %v342_v1 = vmul.f32 %v340_v54, %v334_v24 }
  0x2d   :  { %v343_v6 = vmul.f32 %v341_v61, %v335_v17  ;;  %v216_v3 = vadd.f32 %v214_v55, %v208_v21  ;;  %v217_v4 = vadd.f32 %v215_v62, %v209_v51  ;;  %v222_v10 = vmul.f32 %v906_v27, %v918_v36 }
  0x2e   :  { %193 = vadd.xlane.f32.xlu1 %v192_v63  ;;  %v76_v11 = vmul.f32 0.16666667, %v74_v25  ;;  %v77_v12 = vmul.f32 0.16666667, %v75_v0  ;;  %v344_v13 = vmul.f32 0.16666667, %v342_v1  ;;  %v223_v15 = vmul.f32 %v944_v60, %v918_v36 }
  0x2f   :  { %v345_v30 = vmul.f32 0.16666667, %v343_v6  ;;  %v224_v16 = vadd.f32 %v222_v10, %v216_v3  ;;  %v100_v18 = vmul.f32 %v876_v2, %v930_v46  ;;  %v101_v19 = vmul.f32 %v880_v5, %v930_v46 }
  0x30   :  { %80 = vst.msk [vmem:[#allocation2 + $0x8] sm:$0xff] %vm78_vm0, %v77_v12  ;;  %v81_v20 = vsel %vm78_vm0, %v76_v11, 0.0  ;;  %v82_v22 = vsel %vm78_vm0, %v77_v12, 0.0  ;;  %v349_v23 = vsel %vm78_vm0, %v344_v13, 0.0  ;;  %v225_v24 = vadd.f32 %v223_v15, %v217_v4 }
  0x31   :  { %v83_v26 = vadd.f32 %v82_v22, %v81_v20  ;;  %79 = vst.msk [vmem:[#allocation2] sm:$0xff] %vm78_vm0, %v76_v11  ;;  %v350_v36 = vsel %vm78_vm0, %v345_v30, 0.0  ;;  %v228_v28 = vadd.f32 %v224_v16, %v920_v37  ;;  %v107_v2 = vmul.f32 %v888_v9, %v932_v47 }
  0x32   :  { %347 = vst.msk [vmem:[#allocation2 + $0x50] sm:$0xff] %vm78_vm0, %v344_v13  ;;  %v351_v5 = vadd.f32 %v350_v36, %v349_v23  ;;  %v229_v46 = vadd.f32 %v225_v24, %v920_v37  ;;  %v108_v7 = vmul.f32 %v891_v14, %v932_v47  ;;  %v116_v8 = vmul.f32 %v906_v27, %v939_v58 }
  0x33   :  { %84 = vadd.xlane.f32.xlu0 %v83_v26  ;;  %348 = vst.msk [vmem:[#allocation2 + $0x58] sm:$0xff] %vm78_vm0, %v345_v30  ;;  %v230_v29 = vadd.f32 3.0, %v228_v28  ;;  %v109_v32 = vadd.f32 %v107_v2, %v100_v18  ;;  %v117_v17 = vmul.f32 %v944_v60, %v939_v58 }
  0x34   :  { %352 = vadd.xlane.f32.xlu2 %v351_v5  ;;  %v231_v9 = vadd.f32 3.0, %v229_v46  ;;  %v110_v31 = vadd.f32 %v108_v7, %v101_v19 }
  0x35   :  { %v232_v33 = vmax.f32 %v230_v29, 0.0  ;;  %v118_v34 = vadd.f32 %v116_v8, %v109_v32 }
  0x36   :  { %v233_v37 = vmax.f32 %v231_v9, 0.0  ;;  %v119_v35 = vadd.f32 %v117_v17, %v110_v31 }
  0x37   :  { %v234_v38 = vmin.f32 %v232_v33, 6.0  ;;  %v122_v14 = vadd.f32 %v118_v34, %v942_v59 }
  0x38   :  { %v235_v47 = vmin.f32 %v233_v37, 6.0  ;;  %v123_v27 = vadd.f32 %v119_v35, %v942_v59 }
  0x39   :  { %v236_v39 = vmul.f32 %v234_v38, %v228_v28  ;;  %v124_v40 = vadd.f32 3.0, %v122_v14 }
  0x3a   :  { %v237_v41 = vmul.f32 %v235_v47, %v229_v46  ;;  %v125_v42 = vadd.f32 3.0, %v123_v27 }
  0x3b   :  { %v238_v43 = vmul.f32 0.16666667, %v236_v39  ;;  %v126_v44 = vmax.f32 %v124_v40, 0.0  ;;  %v367_v39 = vstv %s366_s5 }
  0x3c   :  { %v239_v58 = vmul.f32 0.16666667, %v237_v41  ;;  %v127_v60 = vmax.f32 %v125_v42, 0.0 }
  0x3d   :  { %241 = vst.msk [vmem:[#allocation2 + $0x40] sm:$0xff] %vm78_vm0, %v238_v43  ;;  %v243_v45 = vsel %vm78_vm0, %v238_v43, 0.0  ;;  %v128_v21 = vmin.f32 %v126_v44, 6.0  ;;  %v485_v43 = vstv %s484_s7 }
  0x3e   :  { %242 = vst.msk [vmem:[#allocation2 + $0x48] sm:$0xff] %vm78_vm0, %v239_v58  ;;  %v244_v48 = vsel %vm78_vm0, %v239_v58, 0.0  ;;  %v129_v49 = vmin.f32 %v127_v60, 6.0 }
  0x3f   :  { %v245_v50 = vadd.f32 %v244_v48, %v243_v45  ;;  %v130_v59 = vmul.f32 %v128_v21, %v122_v14  ;;  %v601_v21 = vstv %s600_s10 }
  0x40   :  { %v131_v51 = vmul.f32 %v129_v49, %v123_v27 }
  0x41   :  { %246 = vadd.xlane.f32.xlu1 %v245_v50  ;;  %v132_v52 = vmul.f32 0.16666667, %v130_v59 }
  0x42   :  { %v133_v53 = vmul.f32 0.16666667, %v131_v51 }
  0x43   :  { %135 = vst.msk [vmem:[#allocation2 + $0x30] sm:$0xff] %vm78_vm0, %v132_v52  ;;  %v137_v54 = vsel %vm78_vm0, %v132_v52, 0.0  ;;  %v1024_v52 = vld [vmem:[#allocation2] sm:$0xff] }
  0x44   :  { %136 = vst.msk [vmem:[#allocation2 + $0x38] sm:$0xff] %vm78_vm0, %v133_v53  ;;  %v138_v55 = vsel %vm78_vm0, %v133_v53, 0.0  ;;  %v1026_v53 = vld [vmem:[#allocation2 + $0x8] sm:$0xff] }
  0x45   :  { %v139_v56 = vadd.f32 %v138_v55, %v137_v54  ;;  %v1028_v54 = vld [vmem:[#allocation2 + $0x10] sm:$0xff]  ;;  %v1030_v55 = vld [vmem:[#allocation2 + $0x18] sm:$0xff] }
  0x47   :  { %140 = vadd.xlane.f32.xlu0 %v139_v56 }
  0x4a   :  { %v1018_v48 = vld [vmem:[#allocation2 + $0x30] sm:$0xff] }
  0x4b   :  { %v1020_v49 = vld [vmem:[#allocation2 + $0x38] sm:$0xff] }
  0x9c   :  { %v300_v57 = vpop.xlane.xlu2 %299 }
  0x9d   :  { %v301_v10 = vrot.slane %v300_v57, 4 }
  0x9f   :  { %v302_v30 = vadd.f32 %v301_v10, %v300_v57 }
  0xa1   :  { %v194_v25 = vpop.xlane.xlu1 %193  ;;  %v303_v22 = vrot.slane %v302_v30, 2 }
  0xa2   :  { %v195_v11 = vrot.slane %v194_v25, 4 }
  0xa3   :  { %v304_v46 = vadd.f32 %v303_v22, %v302_v30  ;;  %v1059_v22 = vld [vmem:[#allocation2 + $0x20] sm:$0xff] }
  0xa4   :  { %v196_v16 = vadd.f32 %v195_v11, %v194_v25  ;;  %v1052_v11 = vld [vmem:[#allocation2 + $0x58] sm:$0xff] }
  0xa5   :  { %v305_v9 = vrot.slane %v304_v46, 1 }
  0xa6   :  { %v85_v61 = vpop.xlane.xlu0 %84  ;;  %v197_v23 = vrot.slane %v196_v16, 2 }
  0xa7   :  { %v86_v62 = vrot.slane %v85_v61, 4  ;;  %v353_v3 = vpop.xlane.xlu2 %352  ;;  %v306_v38 = vadd.f32 %v305_v9, %v304_v46 }
  0xa8   :  { %v354_v12 = vrot.slane %v353_v3, 4  ;;  %v198_v5 = vadd.f32 %v197_v23, %v196_v16 }
  0xa9   :  { %v87_v63 = vadd.f32 %v86_v62, %v85_v61 }
  0xaa   :  { %v355_v18 = vadd.f32 %v354_v12, %v353_v3  ;;  %v199_v17 = vrot.slane %v198_v5, 1 }
  0xab   :  { %v88_v0 = vrot.slane %v87_v63, 2 }
  0xac   :  { %v356_v26 = vrot.slane %v355_v18, 2  ;;  %v200_v35 = vadd.f32 %v199_v17, %v198_v5 }
  0xad   :  { %v89_v1 = vadd.f32 %v88_v0, %v87_v63  ;;  %v1038_v63 = vld [vmem:[#allocation2 + $0x40] sm:$0xff] }
  0xae   :  { %v357_v8 = vadd.f32 %v356_v26, %v355_v18 }
  0xaf   :  { %v90_v6 = vrot.slane %v89_v1, 1 }
  0xb0   :  { %v358_v33 = vrot.slane %v357_v8, 1 }
  0xb1   :  { %v91_v4 = vadd.f32 %v90_v6, %v89_v1  ;;  %v1044_v1 = vld [vmem:[#allocation2 + $0x50] sm:$0xff] }
  0xb2   :  { %v359_v14 = vadd.f32 %v358_v33, %v357_v8 }
  0xb3   :  { %775 = vpush %v91_v4 }
  0xb4   :  { %v247_v13 = vpop.xlane.xlu1 %246 }
  0xb5   :  { %v248_v15 = vrot.slane %v247_v13, 4 }
  0xb7   :  { %v249_v19 = vadd.f32 %v248_v15, %v247_v13 }
  0xb9   :  { %v250_v20 = vrot.slane %v249_v19, 2 }
  0xba   :  { %v141_v24 = vpop.xlane.xlu0 %140 }
  0xbb   :  { %v142_v36 = vrot.slane %v141_v24, 4  ;;  %v251_v2 = vadd.f32 %v250_v20, %v249_v19 }
  0xbd   :  { %v143_v28 = vadd.f32 %v142_v36, %v141_v24  ;;  %v252_v32 = vrot.slane %v251_v2, 1 }
  0xbf   :  { %v144_v7 = vrot.slane %v143_v28, 2  ;;  %v253_v37 = vadd.f32 %v252_v32, %v251_v2  ;;  %v1068_v2 = vld [vmem:[#allocation2 + $0x48] sm:$0xff] }
  0xc1   :  { %v145_v29 = vadd.f32 %v144_v7, %v143_v28  ;;  %v1066_v28 = vld [vmem:[#allocation2 + $0x28] sm:$0xff] }
  0xc3   :  { %v146_v31 = vrot.slane %v145_v29, 1 }
  0xc5   :  { %v147_v34 = vadd.f32 %v146_v31, %v145_v29 }
  0xc7   :  { %777 = vpush %v147_v34 }
  0xc8   :  { %779 = vpush %v200_v35 }
  0xc9   :  { %781 = vpush %v253_v37 }
  0xca   :  { %783 = vpush %v306_v38 }
  0xcb   :  { %785 = vpush %v359_v14 }
  0xe4   :  { %s776_s6 = spop %775 }
  0xe5   :  { %v93_v47 = vstv %s776_s6 }
  0xf8   :  { %s778_s8 = spop %777 }
  0xf9   :  { %v149_v27 = vstv %s778_s8  ;;  %s780_s9 = spop %779 }
  0xfa   :  { %v150_v40 = vadd.f32 %v149_v27, %v93_v47  ;;  %v202_v41 = vstv %s780_s9  ;;  %s782_s11 = spop %781 }
  0xfb   :  { %v255_v42 = vstv %s782_s11  ;;  %s784_s12 = spop %783 }
  0xfc   :  { %v368_v44 = vadd.f32 %v367_v39, %v150_v40  ;;  %v256_v58 = vadd.f32 %v255_v42, %v202_v41  ;;  %v308_v60 = vstv %s784_s12  ;;  %s786_s13 = spop %785 }
  0xfd   :  { %v361_v45 = vstv %s786_s13 }
  0xfe   :  { %v1022_v50 = vmul.f32 0.0015432099, %v368_v44  ;;  %v486_v59 = vadd.f32 %v485_v43, %v256_v58  ;;  %v362_v51 = vadd.f32 %v361_v45, %v308_v60 }
 0x100   :  { %v1032_v56 = vmul.f32 0.0015432099, %v486_v59  ;;  %v602_v57 = vadd.f32 %v601_v21, %v362_v51  ;;  %v392_v61 = vsub.f32 %v1018_v48, %v1022_v50  ;;  %v393_v62 = vsub.f32 %v1020_v49, %v1022_v50 }
 0x101   :  { %v372_v25 = vsub.f32 %v1024_v52, %v1022_v50  ;;  %v373_v0 = vsub.f32 %v1026_v53, %v1022_v50 }
 0x102   :  { %v1046_v6 = vmul.f32 0.0015432099, %v602_v57  ;;  %v490_v3 = vsub.f32 %v1028_v54, %v1032_v56  ;;  %v491_v4 = vsub.f32 %v1030_v55, %v1032_v56  ;;  %v394_v10 = vmul.f32 %v392_v61, %v392_v61 }
 0x103   :  { %v395_v12 = vmul.f32 %v393_v62, %v393_v62  ;;  %v374_v13 = vmul.f32 %v372_v25, %v372_v25  ;;  %v375_v15 = vmul.f32 %v373_v0, %v373_v0  ;;  %v510_v30 = vsub.f32 %v1038_v63, %v1032_v56 }
 0x104   :  { %v492_v16 = vmul.f32 %v490_v3, %v490_v3  ;;  %v493_v18 = vmul.f32 %v491_v4, %v491_v4  ;;  %v396_v19 = vsel %vm78_vm0, %v394_v10, 0.0  ;;  %v626_v20 = vsub.f32 %v1044_v1, %v1046_v6 }
 0x105   :  { %v397_v23 = vsel %vm78_vm0, %v395_v12, 0.0  ;;  %v376_v24 = vsel %vm78_vm0, %v374_v13, 0.0  ;;  %v377_v26 = vsel %vm78_vm0, %v375_v15, 0.0  ;;  %v627_v36 = vsub.f32 %v1052_v11, %v1046_v6 }
 0x106   :  { %v494_v5 = vsel %vm78_vm0, %v492_v16, 0.0  ;;  %v495_v46 = vsel %vm78_vm0, %v493_v18, 0.0  ;;  %v398_v7 = vadd.f32 %v397_v23, %v396_v19  ;;  %v378_v8 = vadd.f32 %v377_v26, %v376_v24 }
 0x107   :  { %v496_v29 = vadd.f32 %v495_v46, %v494_v5  ;;  %v628_v32 = vmul.f32 %v626_v20, %v626_v20  ;;  %v629_v17 = vmul.f32 %v627_v36, %v627_v36  ;;  %v606_v9 = vsub.f32 %v1059_v22, %v1046_v6 }
 0x108   :  { %399 = vadd.xlane.f32.xlu1 %v398_v7  ;;  %379 = vadd.xlane.f32.xlu0 %v378_v8  ;;  %v607_v31 = vsub.f32 %v1066_v28, %v1046_v6  ;;  %v511_v33 = vsub.f32 %v1068_v2, %v1032_v56  ;;  %v512_v34 = vmul.f32 %v510_v30, %v510_v30 }
 0x109   :  { %497 = vadd.xlane.f32.xlu2 %v496_v29  ;;  %v608_v37 = vmul.f32 %v606_v9, %v606_v9  ;;  %v630_v27 = vsel %vm78_vm0, %v628_v32, 0.0  ;;  %v631_v39 = vsel %vm78_vm0, %v629_v17, 0.0 }
 0x10a   :  { %v609_v35 = vmul.f32 %v607_v31, %v607_v31  ;;  %v513_v38 = vmul.f32 %v511_v33, %v511_v33  ;;  %v514_v47 = vsel %vm78_vm0, %v512_v34, 0.0  ;;  %v632_v44 = vadd.f32 %v631_v39, %v630_v27 }
 0x10b   :  { %v610_v14 = vsel %vm78_vm0, %v608_v37, 0.0  ;;  %v410_v27 = vstv %s1009_s30 }
 0x10c   :  { %v611_v40 = vsel %vm78_vm0, %v609_v35, 0.0  ;;  %v515_v41 = vsel %vm78_vm0, %v513_v38, 0.0  ;;  %v411_v39 = vsub.f32 %v410_v27, %v1022_v50 }
 0x10d   :  { %v612_v42 = vadd.f32 %v611_v40, %v610_v14  ;;  %v516_v43 = vadd.f32 %v515_v41, %v514_v47  ;;  %v528_v41 = vstv %s1011_s3 }
 0x10e   :  { %v412_v40 = vmul.f32 136.0, %v411_v39 }
 0x110   :  { %613 = vadd.xlane.f32.xlu1 %v612_v42  ;;  %517 = vadd.xlane.f32.xlu0 %v516_v43  ;;  %v644_v43 = vstv %s1013_s4 }
 0x111   :  { %633 = vadd.xlane.f32.xlu2 %v632_v44 }
 0x17b   :  { %v400_v58 = vpop.xlane.xlu1 %399  ;;  %v380_v60 = vpop.xlane.xlu0 %379 }
 0x17c   :  { %v498_v45 = vpop.xlane.xlu2 %497  ;;  %v401_v21 = vrot.slane %v400_v58, 4  ;;  %v381_v59 = vrot.slane %v380_v60, 4 }
 0x17d   :  { %v499_v51 = vrot.slane %v498_v45, 4 }
 0x17e   :  { %v402_v57 = vadd.f32 %v401_v21, %v400_v58  ;;  %v382_v61 = vadd.f32 %v381_v59, %v380_v60  ;;  %v529_v58 = vsub.f32 %v528_v41, %v1032_v56  ;;  %v645_v21 = vsub.f32 %v644_v43, %v1046_v6 }
 0x17f   :  { %v500_v62 = vadd.f32 %v499_v51, %v498_v45  ;;  %v413_v45 = vmul.f32 %v412_v40, %v411_v39  ;;  %v545_v39 = vstv %s1096_s21 }
 0x180   :  { %v403_v25 = vrot.slane %v402_v57, 2  ;;  %v383_v0 = vrot.slane %v382_v61, 2  ;;  %v530_v51 = vmul.f32 136.0, %v529_v58 }
 0x181   :  { %v501_v3 = vrot.slane %v500_v62, 2 }
 0x182   :  { %v384_v4 = vadd.f32 %v383_v0, %v382_v61  ;;  %v404_v10 = vadd.f32 %v403_v25, %v402_v57  ;;  %v646_v61 = vmul.f32 136.0, %v645_v21 }
 0x183   :  { %v614_v12 = vpop.xlane.xlu1 %613  ;;  %v518_v13 = vpop.xlane.xlu0 %517  ;;  %v502_v15 = vadd.f32 %v501_v3, %v500_v62 }
 0x184   :  { %v634_v30 = vpop.xlane.xlu2 %633  ;;  %v615_v16 = vrot.slane %v614_v12, 4  ;;  %v519_v18 = vrot.slane %v518_v13, 4  ;;  %v385_v19 = vrot.slane %v384_v4, 1  ;;  %v405_v20 = vrot.slane %v404_v10, 1 }
 0x185   :  { %v635_v23 = vrot.slane %v634_v30, 4  ;;  %v503_v24 = vrot.slane %v502_v15, 1 }
 0x186   :  { %v616_v26 = vadd.f32 %v615_v16, %v614_v12  ;;  %v520_v36 = vadd.f32 %v519_v18, %v518_v13  ;;  %v386_v5 = vadd.f32 %v385_v19, %v384_v4  ;;  %v406_v46 = vadd.f32 %v405_v20, %v404_v10 }
 0x187   :  { %v636_v7 = vadd.f32 %v635_v23, %v634_v30  ;;  %v504_v8 = vadd.f32 %v503_v24, %v502_v15  ;;  %v531_v4 = vmul.f32 %v530_v51, %v529_v58  ;;  %v647_v30 = vmul.f32 %v646_v61, %v645_v21 }
 0x188   :  { %v617_v29 = vrot.slane %v616_v26, 2  ;;  %v521_v32 = vrot.slane %v520_v36, 2  ;;  %787 = vpush %v386_v5 }
 0x189   :  { %v637_v17 = vrot.slane %v636_v7, 2  ;;  %789 = vpush %v406_v46 }
 0x18a   :  { %791 = vpush %v504_v8  ;;  %v522_v9 = vadd.f32 %v521_v32, %v520_v36  ;;  %v618_v31 = vadd.f32 %v617_v29, %v616_v26  ;;  %v427_v32 = vstv %s742_s0 }
 0x18b   :  { %v638_v33 = vadd.f32 %v637_v17, %v636_v7 }
 0x18c   :  { %v523_v34 = vrot.slane %v522_v9, 1  ;;  %v619_v37 = vrot.slane %v618_v31, 1 }
 0x18d   :  { %v639_v35 = vrot.slane %v638_v33, 1 }
 0x18e   :  { %v524_v38 = vadd.f32 %v523_v34, %v522_v9  ;;  %v620_v14 = vadd.f32 %v619_v37, %v618_v31 }
 0x18f   :  { %v640_v47 = vadd.f32 %v639_v35, %v638_v33  ;;  %v430_v35 = vstv %s743_s20 }
 0x190   :  { %793 = vpush %v524_v38 }
 0x191   :  { %795 = vpush %v620_v14 }
 0x192   :  { %797 = vpush %v640_v47 }
 0x1b9   :  { %s788_s14 = spop %787 }
 0x1ba   :  { %v388_v42 = vstv %s788_s14  ;;  %s790_s15 = spop %789 }
 0x1bb   :  { %v408_v44 = vstv %s790_s15  ;;  %s792_s16 = spop %791 }
 0x1bc   :  { %v409_v60 = vadd.f32 %v408_v44, %v388_v42  ;;  %v506_v25 = vstv %s792_s16  ;;  %v548_v42 = vstv %s1098_s22 }
 0x1be   :  { %v414_v59 = vadd.f32 %v413_v45, %v409_v60 }
 0x1c0   :  { %v415_v57 = vmul.f32 0.0015432099, %v414_v59 }
 0x1c1   :  { %s794_s17 = spop %793 }
 0x1c2   :  { %v416_v62 = vadd.f32 1e-05, %v415_v57  ;;  %v526_v0 = vstv %s794_s17  ;;  %s796_s18 = spop %795 }
 0x1c3   :  { %v527_v3 = vadd.f32 %v526_v0, %v506_v25  ;;  %v622_v10 = vstv %s796_s18  ;;  %s798_s19 = spop %797 }
 0x1c4   :  { %804 = vrsqrt.f32 %v416_v62  ;;  %v642_v12 = vstv %s798_s19  ;;  %vm423_vm2 = vweird.f32 %v416_v62 }
 0x1c5   :  { %v532_v13 = vadd.f32 %v531_v4, %v527_v3  ;;  %v643_v15 = vadd.f32 %v642_v12, %v622_v10 }
 0x1c7   :  { %v533_v16 = vmul.f32 0.0015432099, %v532_v13  ;;  %v648_v18 = vadd.f32 %v647_v30, %v643_v15 }
 0x1c9   :  { %v534_v19 = vadd.f32 1e-05, %v533_v16  ;;  %v649_v20 = vmul.f32 0.0015432099, %v648_v18  ;;  %v664_v18 = vstv %s1107_s1 }
 0x1ca   :  { %v805_v23 = vpop.eup %804 }
 0x1cb   :  { %v418_v24 = vmul.f32 %v805_v23, %v416_v62  ;;  %806 = vrsqrt.f32 %v534_v19  ;;  %v650_v26 = vadd.f32 1e-05, %v649_v20  ;;  %vm424_vm1 = vweird.f32 %v805_v23 }
 0x1cc   :  { %vm425_vm3 = vmor %vm423_vm2, %vm424_vm1  ;;  %vm541_vm5 = vweird.f32 %v534_v19 }
 0x1cd   :  { %v419_v36 = vmul.f32 %v805_v23, %v418_v24  ;;  %808 = vrsqrt.f32 %v650_v26  ;;  %vm657_vm8 = vweird.f32 %v650_v26 }
 0x1cf   :  { %v420_v5 = vmul.f32 0.5, %v419_v36 }
 0x1d1   :  { %v807_v46 = vpop.eup %806  ;;  %v421_v7 = vsub.f32 1.5, %v420_v5 }
 0x1d2   :  { %v536_v8 = vmul.f32 %v807_v46, %v534_v19  ;;  %vm542_vm4 = vweird.f32 %v807_v46 }
 0x1d3   :  { %v422_v29 = vmul.f32 %v805_v23, %v421_v7  ;;  %v809_v17 = vpop.eup %808  ;;  %vm543_vm6 = vmor %vm541_vm5, %vm542_vm4 }
 0x1d4   :  { %v537_v9 = vmul.f32 %v807_v46, %v536_v8  ;;  %v652_v33 = vmul.f32 %v809_v17, %v650_v26  ;;  %vm658_vm7 = vweird.f32 %v809_v17 }
 0x1d5   :  { %v426_v31 = vsel %vm425_vm3, %v805_v23, %v422_v29  ;;  %vm659_vm9 = vmor %vm657_vm8, %vm658_vm7 }
 0x1d6   :  { %v428_v34 = vmul.f32 %v427_v32, %v426_v31  ;;  %v538_v37 = vmul.f32 0.5, %v537_v9  ;;  %v653_v38 = vmul.f32 %v809_v17, %v652_v33 }
 0x1d8   :  { %v429_v14 = vmul.f32 %v428_v34, %v1022_v50  ;;  %v539_v47 = vsub.f32 1.5, %v538_v37  ;;  %v432_v40 = vmul.f32 %v428_v34, %v410_v27  ;;  %v654_v44 = vmul.f32 0.5, %v653_v38 }
 0x1d9   :  { %v465_v45 = vmul.f32 %v428_v34, %v1018_v48  ;;  %v443_v21 = vmul.f32 %v428_v34, %v1026_v53  ;;  %v661_v50 = vstv %s1100_s23  ;;  %v442_v51 = vmul.f32 %v428_v34, %v1024_v52 }
 0x1da   :  { %v431_v58 = vsub.f32 %v430_v35, %v429_v14  ;;  %v540_v60 = vmul.f32 %v807_v46, %v539_v47  ;;  %v655_v59 = vsub.f32 1.5, %v654_v44  ;;  %v466_v30 = vmul.f32 %v428_v34, %v1020_v49 }
 0x1dc   :  { %v433_v57 = vadd.f32 %v432_v40, %v431_v58  ;;  %v544_v27 = vsel %vm543_vm6, %v807_v46, %v540_v60  ;;  %v467_v61 = vadd.f32 %v465_v45, %v431_v58  ;;  %v445_v62 = vadd.f32 %v443_v21, %v431_v58 }
 0x1dd   :  { %v546_v25 = vmul.f32 %v545_v39, %v544_v27  ;;  %v656_v0 = vmul.f32 %v809_v17, %v655_v59  ;;  %v444_v3 = vadd.f32 %v442_v51, %v431_v58  ;;  %v468_v20 = vadd.f32 %v466_v30, %v431_v58 }
 0x1de   :  { %v434_v4 = vmax.f32 %v433_v57, 0.0  ;;  %v469_v48 = vmax.f32 %v467_v61, 0.0  ;;  %v447_v53 = vmax.f32 %v445_v62, 0.0 }
 0x1df   :  { %v547_v10 = vmul.f32 %v546_v25, %v1032_v56  ;;  %v660_v12 = vsel %vm659_vm9, %v809_v17, %v656_v0  ;;  %v446_v13 = vmax.f32 %v444_v3, 0.0  ;;  %v550_v52 = vmul.f32 %v546_v25, %v528_v41 }
 0x1e0   :  { %v662_v15 = vmul.f32 %v661_v50, %v660_v12  ;;  %473 = vrot.lane.b32.xlu2 %v469_v48, %s854_s24  ;;  %452 = vrot.lane.b32.xlu1 %v447_v53, %s854_s24  ;;  %v560_v19 = vmul.f32 %v546_v25, %v1030_v55  ;;  %v559_v56 = vmul.f32 %v546_v25, %v1028_v54 }
 0x1e1   :  { %v549_v16 = vsub.f32 %v548_v42, %v547_v10  ;;  %450 = vrot.lane.b32.xlu0 %v446_v13, %s854_s24  ;;  %744 = vst.msk [vmem:[%s1263_s2 + $0x48] sm:$0xff] %vm435_vm10, %v434_v4  ;;  %v582_v8 = vmul.f32 %v546_v25, %v1068_v2  ;;  %v581_v29 = vmul.f32 %v546_v25, %v1038_v63 }
 0x1e2   :  { %v663_v41 = vmul.f32 %v662_v15, %v1046_v6  ;;  %745 = vst.msk [vmem:[%s1263_s2 + $0x50] sm:$0xff] %vm435_vm10, %v434_v4  ;;  %v666_v55 = vmul.f32 %v662_v15, %v644_v43  ;;  %v470_v43 = vmax.f32 %v468_v20, 0.0  ;;  %v675_v7 = vmul.f32 %v662_v15, %v1059_v22 }
 0x1e3   :  { %v551_v49 = vadd.f32 %v550_v52, %v549_v16  ;;  %v562_v23 = vadd.f32 %v560_v19, %v549_v16  ;;  %v561_v24 = vadd.f32 %v559_v56, %v549_v16  ;;  %436 = vst.msk [vmem:[%s1263_s2] sm:$0xff] %vm435_vm10, %v434_v4  ;;  %v584_v17 = vadd.f32 %v582_v8, %v549_v16 }
 0x1e4   :  { %v665_v54 = vsub.f32 %v664_v18, %v663_v41  ;;  %437 = vst.msk [vmem:[%s1263_s2 + $0x8] sm:$0xff] %vm435_vm10, %v434_v4  ;;  %v583_v22 = vadd.f32 %v581_v29, %v549_v16  ;;  %v698_v31 = vmul.f32 %v662_v15, %v1052_v11  ;;  %v697_v33 = vmul.f32 %v662_v15, %v1044_v1 }
 0x1e5   :  { %v552_v6 = vmax.f32 %v551_v49, 0.0  ;;  %v564_v26 = vmax.f32 %v562_v23, 0.0  ;;  %v563_v36 = vmax.f32 %v561_v24, 0.0  ;;  %439 = vst.msk [vmem:[%s1263_s2 + $0x10] sm:$0x3] %vm438_vm11, %v434_v4  ;;  %v586_v2 = vmax.f32 %v584_v17, 0.0 }
 0x1e6   :  { %v667_v5 = vadd.f32 %v666_v55, %v665_v54  ;;  %746 = vst.msk [vmem:[%s1263_s2 + $0x58] sm:$0x3] %vm438_vm11, %v434_v4  ;;  %v677_v32 = vadd.f32 %v675_v7, %v665_v54  ;;  %v585_v9 = vmax.f32 %v583_v22, 0.0  ;;  %v676_v34 = vmul.f32 %v662_v15, %v1066_v28 }
 0x1e7   :  { %752 = vst.msk [vmem:[%s1263_s2 + $0x18] sm:$0xff] %vm435_vm10, %v552_v6  ;;  %v700_v37 = vadd.f32 %v698_v31, %v665_v54  ;;  %v699_v35 = vadd.f32 %v697_v33, %v665_v54 }
 0x1e8   :  { %v668_v46 = vmax.f32 %v667_v5, 0.0  ;;  %569 = vrot.lane.b32.xlu1 %v564_v26, %s854_s24  ;;  %567 = vrot.lane.b32.xlu2 %v563_v36, %s854_s24  ;;  %753 = vst.msk [vmem:[%s1263_s2 + $0x20] sm:$0xff] %vm435_vm10, %v552_v6  ;;  %v679_v63 = vmax.f32 %v677_v32, 0.0  ;;  %v678_v1 = vadd.f32 %v676_v34, %v665_v54 }
 0x1e9   :  { %475 = vrot.lane.b32.xlu0 %v470_v43, %s854_s24  ;;  %757 = vst.msk [vmem:[%s1263_s2 + $0x60] sm:$0xff] %vm435_vm10, %v552_v6  ;;  %v702_v11 = vmax.f32 %v700_v37, 0.0  ;;  %v701_v38 = vmax.f32 %v699_v35, 0.0 }
 0x1ea   :  { %758 = vst.msk [vmem:[%s1263_s2 + $0x68] sm:$0xff] %vm435_vm10, %v552_v6  ;;  %v680_v14 = vmax.f32 %v678_v1, 0.0 }
 0x1eb   :  { %765 = vst.msk [vmem:[%s1263_s2 + $0x30] sm:$0xff] %vm435_vm10, %v668_v46 }
 0x1ec   :  { %766 = vst.msk [vmem:[%s1263_s2 + $0x38] sm:$0xff] %vm435_vm10, %v668_v46 }
 0x1ed   :  { %770 = vst.msk [vmem:[%s1263_s2 + $0x78] sm:$0xff] %vm435_vm10, %v668_v46 }
 0x1ee   :  { %771 = vst.msk [vmem:[%s1263_s2 + $0x80] sm:$0xff] %vm435_vm10, %v668_v46 }
 0x1ef   :  { %759 = vst.msk [vmem:[%s1263_s2 + $0x70] sm:$0x3] %vm438_vm11, %v552_v6 }
 0x1f0   :  { %683 = vrot.lane.b32.xlu1 %v679_v63, %s854_s24  ;;  %591 = vrot.lane.b32.xlu2 %v586_v2, %s854_s24  ;;  %754 = vst.msk [vmem:[%s1263_s2 + $0x28] sm:$0x3] %vm438_vm11, %v552_v6 }
 0x1f1   :  { %589 = vrot.lane.b32.xlu0 %v585_v9, %s854_s24  ;;  %767 = vst.msk [vmem:[%s1263_s2 + $0x40] sm:$0x3] %vm438_vm11, %v668_v46 }
 0x1f2   :  { %772 = vst.msk [vmem:[%s1263_s2 + $0x88] sm:$0x3] %vm438_vm11, %v668_v46 }
 0x1f8   :  { %707 = vrot.lane.b32.xlu1 %v702_v11, %s854_s24  ;;  %705 = vrot.lane.b32.xlu2 %v701_v38, %s854_s24 }
 0x1f9   :  { %685 = vrot.lane.b32.xlu0 %v680_v14, %s854_s24 }
 0x23a   :  { %v474_v28 = vpop.permute.xlu2 %473 }
 0x23b   :  { %747 = vst.msk [vmem:[%s1263_s2 + $0x49] sm:$0xff] %vm456_vm12, %v474_v28 }
 0x242   :  { %v568_v47 = vpop.permute.xlu2 %567 }
 0x243   :  { %755 = vst.msk [vmem:[%s1263_s2 + $0x19] sm:$0xff] %vm456_vm12, %v568_v47 }
 0x24a   :  { %v592_v39 = vpop.permute.xlu2 %591 }
 0x24b   :  { %761 = vst.msk [vmem:[%s1263_s2 + $0x69] sm:$0xff] %vm456_vm12, %v592_v39 }
 0x252   :  { %v453_v40 = vpop.permute.xlu1 %452  ;;  %v706_v42 = vpop.permute.xlu2 %705 }
 0x253   :  { %458 = vst.msk [vmem:[%s1263_s2 + $0x9] sm:$0xff] %vm456_vm12, %v453_v40  ;;  %v451_v44 = vpop.permute.xlu0 %450 }
 0x254   :  { %773 = vst.msk [vmem:[%s1263_s2 + $0x79] sm:$0xff] %vm456_vm12, %v706_v42 }
 0x255   :  { %457 = vst.msk [vmem:[%s1263_s2 + $0x1] sm:$0xff] %vm456_vm12, %v451_v44 }
 0x25a   :  { %v570_v58 = vpop.permute.xlu1 %569 }
 0x25b   :  { %756 = vst.msk [vmem:[%s1263_s2 + $0x21] sm:$0xff] %vm456_vm12, %v570_v58  ;;  %v476_v60 = vpop.permute.xlu0 %475 }
 0x25c   :  { %748 = vst.msk [vmem:[%s1263_s2 + $0x51] sm:$0xff] %vm456_vm12, %v476_v60 }
 0x262   :  { %v684_v45 = vpop.permute.xlu1 %683 }
 0x263   :  { %768 = vst.msk [vmem:[%s1263_s2 + $0x31] sm:$0xff] %vm456_vm12, %v684_v45  ;;  %v590_v21 = vpop.permute.xlu0 %589 }
 0x264   :  { %760 = vst.msk [vmem:[%s1263_s2 + $0x61] sm:$0xff] %vm456_vm12, %v590_v21 }
 0x26a   :  { %v708_v59 = vpop.permute.xlu1 %707 }
 0x26b   :  { %774 = vst.msk [vmem:[%s1263_s2 + $0x81] sm:$0xff] %vm456_vm12, %v708_v59  ;;  %v686_v50 = vpop.permute.xlu0 %685 }
 0x26c   :  { %769 = vst.msk [vmem:[%s1263_s2 + $0x39] sm:$0xff] %vm456_vm12, %v686_v50 }
 0x26d   :  { %717 = vsyncpa [#allocation4], 1 }
 0x26e   :  { %718 = vsyncpa [#allocation5], 1 }

</bundles_post_ra>
